<compile_context>
chip_gen: v6e
topology: v6e:2x2x1
jax: 0.10.0
libtpu: 0.0.40
codegen_flags: <defaults>
</compile_context>

<pallas_src>
import functools

import jax
import jax.numpy as jnp
from jax import lax
from jax.experimental import pallas as pl
from jax.experimental.pallas import tpu as pltpu


D_PAD = 128      # lane-dense padded feature width (>= d_in, d_hidden, d_out)
HEAD_PAD = 128   # lane-dense padded width for the MLP head


def _round_up(v, m):
    return (v + m - 1) // m * m


# ----------------------------------------------------------------------------
# Fused kernel: grid = (layer, edge_tile).  Scratch h / agg persist across grid.
# ----------------------------------------------------------------------------
def fused_gnn_kernel(
    # scalar-prefetch refs (SMEM)
    src_ref, dst_ref,
    # inputs
    ea_ref,      # (TE, edge_dim)        bf16   edge-attr tile
    x_ref,       # (N_pad, D_PAD)        f32    padded node features
    we_ref,      # (1, edge_dim, D_PAD)  bf16   this layer's edge-linear weight
    be_ref,      # (1, 1, D_PAD)         f32
    wn_ref,      # (1, D_PAD, D_PAD)     bf16   this layer's node-update weight
    bn_ref,      # (1, 1, D_PAD)         f32
    eps_ref,     # (2,)                  f32    SMEM
    pool_ref,    # (G, N_pad)            f32    mean-pool operator (1/count folded in)
    wh1_ref,     # (D_PAD, HEAD_PAD)     f32
    bh1_ref,     # (1, HEAD_PAD)         f32
    wh2_ref,     # (HEAD_PAD, HEAD_PAD)  f32
    bh2_ref,     # (1, HEAD_PAD)         f32
    # output
    out_ref,     # (G, HEAD_PAD)         f32
    # scratch
    h_scr,       # (N_pad, D_PAD) f32  current node features
    agg_scr,     # (N_pad, D_PAD) f32  scatter-add accumulator
    ea_lin_scr,  # (TE, D_PAD)    f32  per-tile edge projection
    *, tile_e, unroll,
):
    layer = pl.program_id(0)
    t = pl.program_id(1)
    n_tiles = pl.num_programs(1)

    @pl.when(jnp.logical_and(layer == 0, t == 0))
    def _init():
        h_scr[...] = x_ref[...]
        agg_scr[...] = jnp.zeros_like(agg_scr)
        out_ref[...] = jnp.zeros_like(out_ref)

    # Edge-attr projection for this tile on the MXU (bf16 operands, f32 accumulate).
    ea_lin_scr[...] = (
        jnp.dot(ea_ref[0:tile_e], we_ref[0], preferred_element_type=jnp.float32)
        + be_ref[0]
    )

    base = t * tile_e

    # Per-edge: gather lane-dense (1,128) src row -> relu(x_src + ea_lin) -> scatter-add.
    # Explicit 8-way unroll inside the fori body lets independent-dst RMW chains
    # interleave; Ref effect ordering keeps duplicate-dst updates correct.
    def body(j, carry):
        i0 = j * unroll
        for k in range(unroll):
            i = i0 + k
            s_idx = src_ref[base + i]
            d_idx = dst_ref[base + i]
            msg = jnp.maximum(
                h_scr[pl.ds(s_idx, 1), :] + ea_lin_scr[pl.ds(i, 1), :], 0.0)
            agg_scr[pl.ds(d_idx, 1), :] = agg_scr[pl.ds(d_idx, 1), :] + msg
        return carry

    lax.fori_loop(0, tile_e // unroll, body, 0)

    # Node update on the last edge tile of this layer:
    #   h <- ((1+eps)*h + agg) @ W_n + b_n   (ReLU only after layer 0)
    @pl.when(t == n_tiles - 1)
    def _finalize_layer():
        z = (1.0 + eps_ref[layer]) * h_scr[...] + agg_scr[...]
        hn = jnp.dot(z.astype(jnp.bfloat16), wn_ref[0],
                     preferred_element_type=jnp.float32) + bn_ref[0]
        h_scr[...] = jnp.where(layer == 0, jnp.maximum(hn, 0.0), hn)
        agg_scr[...] = jnp.zeros_like(agg_scr)     # reset for the next layer

    # After the last layer: mean-pool + MLP head (lane-dense (G, 128) output).
    @pl.when(jnp.logical_and(t == n_tiles - 1, layer == 1))
    def _head():
        pooled = jnp.dot(pool_ref[...], h_scr[...], preferred_element_type=jnp.float32)
        zz = jnp.maximum(
            jnp.dot(pooled, wh1_ref[...], preferred_element_type=jnp.float32)
            + bh1_ref[...], 0.0)
        logits = (jnp.dot(zz, wh2_ref[...], preferred_element_type=jnp.float32)
                  + bh2_ref[...])
        out_ref[...] = jax.nn.sigmoid(logits)


# ----------------------------------------------------------------------------
# Wrapper: padding, weight stacking/padding, single pallas_call.
# ----------------------------------------------------------------------------
def gnn_forward(x, edge_index, edge_attr, batch_idx, params, num_graphs, *,
                tile_e=128, unroll=8):
    N, d_in = x.shape
    E, edge_dim = edge_attr.shape
    d_hidden = params["wn1"].shape[1]
    d_out = params["wn2"].shape[1]
    head_hid = params["wh1"].shape[1]
    assert max(d_in, d_hidden, d_out) <= D_PAD and head_hid <= HEAD_PAD
    assert tile_e % unroll == 0

    f32, bf16 = jnp.float32, jnp.bfloat16

    # Node padding with a "dump" row (index N) absorbing padded-edge messages.
    n_pad = _round_up(N + 1, 8)
    e_pad = _round_up(E, tile_e)
    n_tiles = e_pad // tile_e

    x_p = jnp.zeros((n_pad, D_PAD), f32).at[:N, :d_in].set(x.astype(f32))

    src = jnp.full((e_pad,), N, jnp.int32).at[:E].set(edge_index[0].astype(jnp.int32))
    dst = jnp.full((e_pad,), N, jnp.int32).at[:E].set(edge_index[1].astype(jnp.int32))
    ea_p = jnp.zeros((e_pad, edge_dim), bf16).at[:E].set(edge_attr.astype(bf16))

    # Sort edges by destination (sum is permutation-invariant): scatter locality and
    # adjacent duplicate-dst runs for the unrolled RMW loop.
    perm = jnp.argsort(dst)
    src, dst, ea_p = src[perm], dst[perm], ea_p[perm]

    # Stacked, 128-lane-padded per-layer weights.  Padded columns/rows are zero and stay
    # zero through the whole pipeline, so the math matches the unpadded model exactly.
    we = (jnp.zeros((2, edge_dim, D_PAD), bf16)
          .at[0, :, :d_in].set(params["we1"].astype(bf16))
          .at[1, :, :d_hidden].set(params["we2"].astype(bf16)))
    be = (jnp.zeros((2, 1, D_PAD), f32)
          .at[0, :, :d_in].set(params["be1"])
          .at[1, :, :d_hidden].set(params["be2"]))
    wn = (jnp.zeros((2, D_PAD, D_PAD), bf16)
          .at[0, :d_in, :d_hidden].set(params["wn1"].astype(bf16))
          .at[1, :d_hidden, :d_out].set(params["wn2"].astype(bf16)))
    bn = (jnp.zeros((2, 1, D_PAD), f32)
          .at[0, :, :d_hidden].set(params["bn1"])
          .at[1, :, :d_out].set(params["bn2"]))
    eps = jnp.concatenate([params["eps1"], params["eps2"]]).astype(f32)   # (2,)

    # Mean-pool operator with 1/count folded in; dump row / padded rows are zeroed.
    pool_oh = jax.nn.one_hot(batch_idx, num_graphs, dtype=f32).T          # (G, N)
    counts = jnp.maximum(pool_oh.sum(axis=1, keepdims=True), 1.0)
    pool = jnp.zeros((num_graphs, n_pad), f32).at[:, :N].set(pool_oh / counts)

    # Head weights, 128-lane padded (kept f32: tiny matmuls, better accuracy).
    wh1p = jnp.zeros((D_PAD, HEAD_PAD), f32).at[:d_out, :head_hid].set(params["wh1"])
    bh1p = jnp.zeros((1, HEAD_PAD), f32).at[:, :head_hid].set(params["bh1"])
    wh2p = jnp.zeros((HEAD_PAD, HEAD_PAD), f32).at[:head_hid, :1].set(params["wh2"])
    bh2p = jnp.zeros((1, HEAD_PAD), f32).at[:, :1].set(params["bh2"])

    grid_spec = pltpu.PrefetchScalarGridSpec(
        num_scalar_prefetch=2,
        grid=(2, n_tiles),                                   # (layer, edge-tile)
        in_specs=[
            pl.BlockSpec((tile_e, edge_dim), lambda l, t, s, d: (t, 0)),   # edge_attr
            pl.BlockSpec((n_pad, D_PAD), lambda l, t, s, d: (0, 0)),       # x (padded)
            pl.BlockSpec((1, edge_dim, D_PAD), lambda l, t, s, d: (l, 0, 0)),  # W_e[l]
            pl.BlockSpec((1, 1, D_PAD), lambda l, t, s, d: (l, 0, 0)),         # b_e[l]
            pl.BlockSpec((1, D_PAD, D_PAD), lambda l, t, s, d: (l, 0, 0)),     # W_n[l]
            pl.BlockSpec((1, 1, D_PAD), lambda l, t, s, d: (l, 0, 0)),         # b_n[l]
            pl.BlockSpec(memory_space=pltpu.MemorySpace.SMEM),                 # eps
            pl.BlockSpec((num_graphs, n_pad), lambda l, t, s, d: (0, 0)),      # pool
            pl.BlockSpec((D_PAD, HEAD_PAD), lambda l, t, s, d: (0, 0)),        # Wh1
            pl.BlockSpec((1, HEAD_PAD), lambda l, t, s, d: (0, 0)),            # bh1
            pl.BlockSpec((HEAD_PAD, HEAD_PAD), lambda l, t, s, d: (0, 0)),     # Wh2
            pl.BlockSpec((1, HEAD_PAD), lambda l, t, s, d: (0, 0)),            # bh2
        ],
        out_specs=pl.BlockSpec((num_graphs, HEAD_PAD), lambda l, t, s, d: (0, 0)),
        scratch_shapes=[
            pltpu.VMEM((n_pad, D_PAD), f32),    # h (current node features)
            pltpu.VMEM((n_pad, D_PAD), f32),    # agg accumulator
            pltpu.VMEM((tile_e, D_PAD), f32),   # ea_lin tile
        ],
    )
    kernel = functools.partial(fused_gnn_kernel, tile_e=tile_e, unroll=unroll)
    out_padded = pl.pallas_call(
        kernel,
        out_shape=jax.ShapeDtypeStruct((num_graphs, HEAD_PAD), f32),
        grid_spec=grid_spec,
        compiler_params=pltpu.CompilerParams(
            # both axes carry state in scratch -> strictly sequential
            dimension_semantics=("arbitrary", "arbitrary"),
            vmem_limit_bytes=32 * 1024 * 1024),
    )(src, dst, ea_p, x_p, we, be, wn, bn, eps, pool, wh1p, bh1p, wh2p, bh2p)
    return out_padded[:, :1]                                  # (G, 1)


# ----------------------------------------------------------------------------
# Params + pure-JAX reference.
# ----------------------------------------------------------------------------
def init_params(key, d_in, d_hidden, d_out, edge_dim):
    ks = jax.random.split(key, 6)
    f = jnp.float32

    def lin(k, fan_in, fan_out):
        bound = 1.0 / jnp.sqrt(f(fan_in))
        kw, kb = jax.random.split(k)
        w = jax.random.uniform(kw, (fan_in, fan_out), f, -bound, bound)
        b = jax.random.uniform(kb, (1, fan_out), f, -bound, bound)
        return w, b

    we1, be1 = lin(ks[0], edge_dim, d_in)       # GINE1 edge lin: edge_dim -> d_in
    wn1, bn1 = lin(ks[1], d_in, d_hidden)       # GINE1 nn: d_in -> d_hidden
    we2, be2 = lin(ks[2], edge_dim, d_hidden)   # GINE2 edge lin: edge_dim -> d_hidden
    wn2, bn2 = lin(ks[3], d_hidden, d_out)      # GINE2 nn: d_hidden -> d_out
    wh1, bh1 = lin(ks[4], d_out, 10)            # head Linear(d_out, 10)
    wh2, bh2 = lin(ks[5], 10, 1)                # head Linear(10, 1)

    return dict(
        we1=we1, be1=be1, wn1=wn1, bn1=bn1, eps1=jnp.zeros((1,), f),  # train_eps init 0
        we2=we2, be2=be2, wn2=wn2, bn2=bn2, eps2=jnp.zeros((1,), f),
        wh1=wh1, bh1=bh1, wh2=wh2, bh2=bh2,
    )


def reference_forward(x, edge_index, edge_attr, batch_idx, params, num_graphs):
    src = edge_index[0]
    dst = edge_index[1]

    def gine(h, we, be, wn, bn, eps):
        ea_lin = edge_attr @ we + be
        m = jax.nn.relu(h[src] + ea_lin)
        agg = jax.ops.segment_sum(m, dst, num_segments=h.shape[0])
        return ((1.0 + eps[0]) * h + agg) @ wn + bn

    h = jax.nn.relu(gine(x, params["we1"], params["be1"],
                         params["wn1"], params["bn1"], params["eps1"]))
    h = gine(h, params["we2"], params["be2"],
             params["wn2"], params["bn2"], params["eps2"])
    sums = jax.ops.segment_sum(h, batch_idx, num_segments=num_graphs)
    cnt = jnp.maximum(
        jax.ops.segment_sum(jnp.ones((x.shape[0],), jnp.float32), batch_idx,
                            num_segments=num_graphs), 1.0)
    pooled = sums / cnt[:, None]
    z = jax.nn.relu(pooled @ params["wh1"] + params["bh1"])
    return jax.nn.sigmoid(z @ params["wh2"] + params["bh2"])


if __name__ == "__main__":
    d_in, d_hidden, d_out, edge_dim = 8, 32, 16, 8
    N, E, G = 16, 32, 2   # 16 nodes (8 per graph), 32 edges, 2 graphs

    key = jax.random.PRNGKey(0)
    k_x, k_ea, k_e1, k_e2, k_p = jax.random.split(key, 5)

    x = jax.random.normal(k_x, (N, d_in), jnp.float32)
    edge_attr = jax.random.normal(k_ea, (E, edge_dim), jnp.float32)

    # edges confined within each graph (first half graph 0, second half graph 1)
    src0 = jax.random.randint(k_e1, (E // 2,), 0, 8)
    dst0 = jax.random.randint(k_e2, (E // 2,), 0, 8)
    src = jnp.concatenate([src0, src0 + 8]).astype(jnp.int32)
    dst = jnp.concatenate([dst0, dst0 + 8]).astype(jnp.int32)
    edge_index = jnp.stack([src, dst], axis=0)                # (2, E)

    batch_idx = jnp.concatenate(
        [jnp.zeros((8,), jnp.int32), jnp.ones((8,), jnp.int32)]
    )

    params = init_params(k_p, d_in, d_hidden, d_out, edge_dim)

    out = gnn_forward(x, edge_index, edge_attr, batch_idx, params,
                      num_graphs=G, tile_e=128, unroll=8)
    out = jax.block_until_ready(out)

    ref = reference_forward(x, edge_index, edge_attr, batch_idx, params, G)

    assert out.shape == (G, 1)
    assert bool(jnp.all((out >= 0.0) & (out <= 1.0)))
    # bf16 MXU inputs in the kernel vs f32 reference -> relaxed tolerance
    assert float(jnp.max(jnp.abs(out - ref))) < 5e-2
    print("KERNEL_OK")
</pallas_src>

<mosaic_0001>
module attributes {stable_mosaic.version = 11 : i64} {
  func.func @fused_gnn_kernel(%arg0: i32, %arg1: i32, %arg2: memref<128xi32, #tpu.memory_space<smem>>, %arg3: memref<128xi32, #tpu.memory_space<smem>>, %arg4: memref<128x8xbf16, #tpu.memory_space<vmem>>, %arg5: memref<24x128xf32, #tpu.memory_space<vmem>>, %arg6: memref<1x8x128xbf16, #tpu.memory_space<vmem>>, %arg7: memref<1x1x128xf32, #tpu.memory_space<vmem>>, %arg8: memref<1x128x128xbf16, #tpu.memory_space<vmem>>, %arg9: memref<1x1x128xf32, #tpu.memory_space<vmem>>, %arg10: memref<2xf32, #tpu.memory_space<smem>>, %arg11: memref<2x24xf32, #tpu.memory_space<vmem>>, %arg12: memref<128x128xf32, #tpu.memory_space<vmem>>, %arg13: memref<1x128xf32, #tpu.memory_space<vmem>>, %arg14: memref<128x128xf32, #tpu.memory_space<vmem>>, %arg15: memref<1x128xf32, #tpu.memory_space<vmem>>, %arg16: memref<2x128xf32, #tpu.memory_space<vmem>>, %arg17: memref<24x128xf32, #tpu.memory_space<vmem>>, %arg18: memref<24x128xf32, #tpu.memory_space<vmem>>, %arg19: memref<128x128xf32, #tpu.memory_space<vmem>>) attributes {dimension_semantics = [#tpu.dimension_semantics<arbitrary>, #tpu.dimension_semantics<arbitrary>], iteration_bounds = array<i64: 2, 1>, scalar_prefetch = 2 : i64, scratch_operands = 3 : i64, tpu.core_type = #tpu.core_type<tc>, window_params = [{transform_indices = @transform_0, window_bounds = array<i64: 128, 8>}, {pipeline_mode = #tpu.pipeline_mode<synchronous>, transform_indices = @transform_1, window_bounds = array<i64: 24, 128>}, {transform_indices = @transform_2, window_bounds = array<i64: 1, 8, 128>}, {transform_indices = @transform_3, window_bounds = array<i64: 1, 1, 128>}, {transform_indices = @transform_4, window_bounds = array<i64: 1, 128, 128>}, {transform_indices = @transform_5, window_bounds = array<i64: 1, 1, 128>}, {transform_indices = @transform_6, window_bounds = array<i64: 2>}, {pipeline_mode = #tpu.pipeline_mode<synchronous>, transform_indices = @transform_7, window_bounds = array<i64: 2, 24>}, {pipeline_mode = #tpu.pipeline_mode<synchronous>, transform_indices = @transform_8, window_bounds = array<i64: 128, 128>}, {pipeline_mode = #tpu.pipeline_mode<synchronous>, transform_indices = @transform_9, window_bounds = array<i64: 1, 128>}, {pipeline_mode = #tpu.pipeline_mode<synchronous>, transform_indices = @transform_10, window_bounds = array<i64: 128, 128>}, {pipeline_mode = #tpu.pipeline_mode<synchronous>, transform_indices = @transform_11, window_bounds = array<i64: 1, 128>}, {pipeline_mode = #tpu.pipeline_mode<synchronous>, transform_indices = @transform_12, window_bounds = array<i64: 2, 128>}]} {
    %c0_i32 = arith.constant 0 : i32
    %0 = arith.cmpi eq, %arg0, %c0_i32 : i32
    %c0_i32_0 = arith.constant 0 : i32
    %1 = arith.cmpi eq, %arg1, %c0_i32_0 : i32
    %2 = arith.andi %0, %1 : i1
    %3 = arith.extui %2 : i1 to i32
    %c0_i32_1 = arith.constant 0 : i32
    %4 = arith.cmpi ne, %3, %c0_i32_1 : i32
    scf.if %4 {
      %c0_18 = arith.constant 0 : index
      %c0_19 = arith.constant 0 : index
      %24 = vector.load %arg5[%c0_18, %c0_19] : memref<24x128xf32, #tpu.memory_space<vmem>>, vector<24x128xf32>
      %c0_20 = arith.constant 0 : index
      %c0_21 = arith.constant 0 : index
      %25 = vector.load %arg17[%c0_20, %c0_21] : memref<24x128xf32, #tpu.memory_space<vmem>>, vector<24x128xf32>
      tpu.vector_store %arg17[%c0_20, %c0_21], %24 {strides = array<i32>} : memref<24x128xf32, #tpu.memory_space<vmem>>, vector<24x128xf32>,
      %cst_22 = arith.constant 0.000000e+00 : f32
      %26 = vector.broadcast %cst_22 : f32 to vector<24x128xf32>
      %c0_23 = arith.constant 0 : index
      %c0_24 = arith.constant 0 : index
      %27 = vector.load %arg18[%c0_23, %c0_24] : memref<24x128xf32, #tpu.memory_space<vmem>>, vector<24x128xf32>
      tpu.vector_store %arg18[%c0_23, %c0_24], %26 {strides = array<i32>} : memref<24x128xf32, #tpu.memory_space<vmem>>, vector<24x128xf32>,
      %cst_25 = arith.constant 0.000000e+00 : f32
      %28 = vector.broadcast %cst_25 : f32 to vector<2x128xf32>
      %c0_26 = arith.constant 0 : index
      %c0_27 = arith.constant 0 : index
      %29 = vector.load %arg16[%c0_26, %c0_27] : memref<2x128xf32, #tpu.memory_space<vmem>>, vector<2x128xf32>
      tpu.vector_store %arg16[%c0_26, %c0_27], %28 {strides = array<i32>} : memref<2x128xf32, #tpu.memory_space<vmem>>, vector<2x128xf32>,
    } else {
    }
    %c0 = arith.constant 0 : index
    %c0_2 = arith.constant 0 : index
    %5 = vector.load %arg4[%c0, %c0_2] : memref<128x8xbf16, #tpu.memory_space<vmem>>, vector<128x8xbf16>
    %c0_3 = arith.constant 0 : index
    %c0_4 = arith.constant 0 : index
    %c0_5 = arith.constant 0 : index
    %6 = vector.load %arg6[%c0_3, %c0_4, %c0_5] : memref<1x8x128xbf16, #tpu.memory_space<vmem>>, vector<1x8x128xbf16>
    %7 = vector.shape_cast %6 : vector<1x8x128xbf16> to vector<8x128xbf16>
    %cst = arith.constant dense<0.000000e+00> : vector<128x128xf32>
    %8 = tpu.matmul %5, %7, %cst {dimension_numbers = #tpu.dot_dimension_numbers<[1], [0], [0], [1], [0, 0, 1, 1], [], []>} : vector<128x8xbf16>, vector<8x128xbf16>, vector<128x128xf32> -> vector<128x128xf32>
    %c0_6 = arith.constant 0 : index
    %c0_7 = arith.constant 0 : index
    %c0_8 = arith.constant 0 : index
    %9 = vector.load %arg7[%c0_6, %c0_7, %c0_8] : memref<1x1x128xf32, #tpu.memory_space<vmem>>, vector<1x1x128xf32>
    %10 = vector.shape_cast %9 : vector<1x1x128xf32> to vector<1x128xf32>
    %11 = vector.broadcast %10 : vector<1x128xf32> to vector<128x128xf32>
    %12 = arith.addf %8, %11 : vector<128x128xf32>
    %c0_9 = arith.constant 0 : index
    %c0_10 = arith.constant 0 : index
    %13 = vector.load %arg19[%c0_9, %c0_10] : memref<128x128xf32, #tpu.memory_space<vmem>>, vector<128x128xf32>
    tpu.vector_store %arg19[%c0_9, %c0_10], %12 {strides = array<i32>} : memref<128x128xf32, #tpu.memory_space<vmem>>, vector<128x128xf32>,
    %c128_i32 = arith.constant 128 : i32
    %14 = arith.muli %arg1, %c128_i32 : i32
    %c0_i32_11 = arith.constant 0 : i32
    %c16_i32 = arith.constant 16 : i32
    %15 = arith.addi %c0_i32_11, %c16_i32 : i32
    %c1_i32 = arith.constant 1 : i32
    scf.for %arg20 = %c0_i32_11 to %15 step %c1_i32  : i32 {
      %c8_i32 = arith.constant 8 : i32
      %24 = arith.muli %arg20, %c8_i32 : i32
      %c0_i32_18 = arith.constant 0 : i32
      %25 = arith.addi %24, %c0_i32_18 : i32
      %26 = arith.addi %14, %25 : i32
      %27 = arith.index_cast %26 : i32 to index
      %28 = memref.load %arg2[%27] : memref<128xi32, #tpu.memory_space<smem>>
      %29 = arith.addi %14, %25 : i32
      %30 = arith.index_cast %29 : i32 to index
      %31 = memref.load %arg3[%30] : memref<128xi32, #tpu.memory_space<smem>>
      %32 = arith.index_cast %28 : i32 to index
      %c0_19 = arith.constant 0 : index
      %33 = vector.load %arg17[%32, %c0_19] : memref<24x128xf32, #tpu.memory_space<vmem>>, vector<1x128xf32>
      %34 = arith.index_cast %25 : i32 to index
      %c0_20 = arith.constant 0 : index
      %35 = vector.load %arg19[%34, %c0_20] : memref<128x128xf32, #tpu.memory_space<vmem>>, vector<1x128xf32>
      %36 = arith.addf %33, %35 : vector<1x128xf32>
      %cst_21 = arith.constant 0.000000e+00 : f32
      %37 = vector.broadcast %cst_21 : f32 to vector<1x128xf32>
      %38 = arith.maximumf %36, %37 : vector<1x128xf32>
      %39 = arith.index_cast %31 : i32 to index
      %c0_22 = arith.constant 0 : index
      %40 = vector.load %arg18[%39, %c0_22] : memref<24x128xf32, #tpu.memory_space<vmem>>, vector<1x128xf32>
      %41 = arith.addf %40, %38 : vector<1x128xf32>
      %42 = arith.index_cast %31 : i32 to index
      %c0_23 = arith.constant 0 : index
      %43 = vector.load %arg18[%42, %c0_23] : memref<24x128xf32, #tpu.memory_space<vmem>>, vector<1x128xf32>
      tpu.vector_store %arg18[%42, %c0_23], %41 {strides = array<i32>} : memref<24x128xf32, #tpu.memory_space<vmem>>, vector<1x128xf32>,
      %c1_i32_24 = arith.constant 1 : i32
      %44 = arith.addi %24, %c1_i32_24 : i32
      %45 = arith.addi %14, %44 : i32
      %46 = arith.index_cast %45 : i32 to index
      %47 = memref.load %arg2[%46] : memref<128xi32, #tpu.memory_space<smem>>
      %48 = arith.addi %14, %44 : i32
      %49 = arith.index_cast %48 : i32 to index
      %50 = memref.load %arg3[%49] : memref<128xi32, #tpu.memory_space<smem>>
      %51 = arith.index_cast %47 : i32 to index
      %c0_25 = arith.constant 0 : index
      %52 = vector.load %arg17[%51, %c0_25] : memref<24x128xf32, #tpu.memory_space<vmem>>, vector<1x128xf32>
      %53 = arith.index_cast %44 : i32 to index
      %c0_26 = arith.constant 0 : index
      %54 = vector.load %arg19[%53, %c0_26] : memref<128x128xf32, #tpu.memory_space<vmem>>, vector<1x128xf32>
      %55 = arith.addf %52, %54 : vector<1x128xf32>
      %cst_27 = arith.constant 0.000000e+00 : f32
      %56 = vector.broadcast %cst_27 : f32 to vector<1x128xf32>
      %57 = arith.maximumf %55, %56 : vector<1x128xf32>
      %58 = arith.index_cast %50 : i32 to index
      %c0_28 = arith.constant 0 : index
      %59 = vector.load %arg18[%58, %c0_28] : memref<24x128xf32, #tpu.memory_space<vmem>>, vector<1x128xf32>
      %60 = arith.addf %59, %57 : vector<1x128xf32>
      %61 = arith.index_cast %50 : i32 to index
      %c0_29 = arith.constant 0 : index
      %62 = vector.load %arg18[%61, %c0_29] : memref<24x128xf32, #tpu.memory_space<vmem>>, vector<1x128xf32>
      tpu.vector_store %arg18[%61, %c0_29], %60 {strides = array<i32>} : memref<24x128xf32, #tpu.memory_space<vmem>>, vector<1x128xf32>,
      %c2_i32 = arith.constant 2 : i32
      %63 = arith.addi %24, %c2_i32 : i32
      %64 = arith.addi %14, %63 : i32
      %65 = arith.index_cast %64 : i32 to index
      %66 = memref.load %arg2[%65] : memref<128xi32, #tpu.memory_space<smem>>
      %67 = arith.addi %14, %63 : i32
      %68 = arith.index_cast %67 : i32 to index
      %69 = memref.load %arg3[%68] : memref<128xi32, #tpu.memory_space<smem>>
      %70 = arith.index_cast %66 : i32 to index
      %c0_30 = arith.constant 0 : index
      %71 = vector.load %arg17[%70, %c0_30] : memref<24x128xf32, #tpu.memory_space<vmem>>, vector<1x128xf32>
      %72 = arith.index_cast %63 : i32 to index
      %c0_31 = arith.constant 0 : index
      %73 = vector.load %arg19[%72, %c0_31] : memref<128x128xf32, #tpu.memory_space<vmem>>, vector<1x128xf32>
      %74 = arith.addf %71, %73 : vector<1x128xf32>
      %cst_32 = arith.constant 0.000000e+00 : f32
      %75 = vector.broadcast %cst_32 : f32 to vector<1x128xf32>
      %76 = arith.maximumf %74, %75 : vector<1x128xf32>
      %77 = arith.index_cast %69 : i32 to index
      %c0_33 = arith.constant 0 : index
      %78 = vector.load %arg18[%77, %c0_33] : memref<24x128xf32, #tpu.memory_space<vmem>>, vector<1x128xf32>
      %79 = arith.addf %78, %76 : vector<1x128xf32>
      %80 = arith.index_cast %69 : i32 to index
      %c0_34 = arith.constant 0 : index
      %81 = vector.load %arg18[%80, %c0_34] : memref<24x128xf32, #tpu.memory_space<vmem>>, vector<1x128xf32>
      tpu.vector_store %arg18[%80, %c0_34], %79 {strides = array<i32>} : memref<24x128xf32, #tpu.memory_space<vmem>>, vector<1x128xf32>,
      %c3_i32 = arith.constant 3 : i32
      %82 = arith.addi %24, %c3_i32 : i32
      %83 = arith.addi %14, %82 : i32
      %84 = arith.index_cast %83 : i32 to index
      %85 = memref.load %arg2[%84] : memref<128xi32, #tpu.memory_space<smem>>
      %86 = arith.addi %14, %82 : i32
      %87 = arith.index_cast %86 : i32 to index
      %88 = memref.load %arg3[%87] : memref<128xi32, #tpu.memory_space<smem>>
      %89 = arith.index_cast %85 : i32 to index
      %c0_35 = arith.constant 0 : index
      %90 = vector.load %arg17[%89, %c0_35] : memref<24x128xf32, #tpu.memory_space<vmem>>, vector<1x128xf32>
      %91 = arith.index_cast %82 : i32 to index
      %c0_36 = arith.constant 0 : index
      %92 = vector.load %arg19[%91, %c0_36] : memref<128x128xf32, #tpu.memory_space<vmem>>, vector<1x128xf32>
      %93 = arith.addf %90, %92 : vector<1x128xf32>
      %cst_37 = arith.constant 0.000000e+00 : f32
      %94 = vector.broadcast %cst_37 : f32 to vector<1x128xf32>
      %95 = arith.maximumf %93, %94 : vector<1x128xf32>
      %96 = arith.index_cast %88 : i32 to index
      %c0_38 = arith.constant 0 : index
      %97 = vector.load %arg18[%96, %c0_38] : memref<24x128xf32, #tpu.memory_space<vmem>>, vector<1x128xf32>
      %98 = arith.addf %97, %95 : vector<1x128xf32>
      %99 = arith.index_cast %88 : i32 to index
      %c0_39 = arith.constant 0 : index
      %100 = vector.load %arg18[%99, %c0_39] : memref<24x128xf32, #tpu.memory_space<vmem>>, vector<1x128xf32>
      tpu.vector_store %arg18[%99, %c0_39], %98 {strides = array<i32>} : memref<24x128xf32, #tpu.memory_space<vmem>>, vector<1x128xf32>,
      %c4_i32 = arith.constant 4 : i32
      %101 = arith.addi %24, %c4_i32 : i32
      %102 = arith.addi %14, %101 : i32
      %103 = arith.index_cast %102 : i32 to index
      %104 = memref.load %arg2[%103] : memref<128xi32, #tpu.memory_space<smem>>
      %105 = arith.addi %14, %101 : i32
      %106 = arith.index_cast %105 : i32 to index
      %107 = memref.load %arg3[%106] : memref<128xi32, #tpu.memory_space<smem>>
      %108 = arith.index_cast %104 : i32 to index
      %c0_40 = arith.constant 0 : index
      %109 = vector.load %arg17[%108, %c0_40] : memref<24x128xf32, #tpu.memory_space<vmem>>, vector<1x128xf32>
      %110 = arith.index_cast %101 : i32 to index
      %c0_41 = arith.constant 0 : index
      %111 = vector.load %arg19[%110, %c0_41] : memref<128x128xf32, #tpu.memory_space<vmem>>, vector<1x128xf32>
      %112 = arith.addf %109, %111 : vector<1x128xf32>
      %cst_42 = arith.constant 0.000000e+00 : f32
      %113 = vector.broadcast %cst_42 : f32 to vector<1x128xf32>
      %114 = arith.maximumf %112, %113 : vector<1x128xf32>
      %115 = arith.index_cast %107 : i32 to index
      %c0_43 = arith.constant 0 : index
      %116 = vector.load %arg18[%115, %c0_43] : memref<24x128xf32, #tpu.memory_space<vmem>>, vector<1x128xf32>
      %117 = arith.addf %116, %114 : vector<1x128xf32>
      %118 = arith.index_cast %107 : i32 to index
      %c0_44 = arith.constant 0 : index
      %119 = vector.load %arg18[%118, %c0_44] : memref<24x128xf32, #tpu.memory_space<vmem>>, vector<1x128xf32>
      tpu.vector_store %arg18[%118, %c0_44], %117 {strides = array<i32>} : memref<24x128xf32, #tpu.memory_space<vmem>>, vector<1x128xf32>,
      %c5_i32 = arith.constant 5 : i32
      %120 = arith.addi %24, %c5_i32 : i32
      %121 = arith.addi %14, %120 : i32
      %122 = arith.index_cast %121 : i32 to index
      %123 = memref.load %arg2[%122] : memref<128xi32, #tpu.memory_space<smem>>
      %124 = arith.addi %14, %120 : i32
      %125 = arith.index_cast %124 : i32 to index
      %126 = memref.load %arg3[%125] : memref<128xi32, #tpu.memory_space<smem>>
      %127 = arith.index_cast %123 : i32 to index
      %c0_45 = arith.constant 0 : index
      %128 = vector.load %arg17[%127, %c0_45] : memref<24x128xf32, #tpu.memory_space<vmem>>, vector<1x128xf32>
      %129 = arith.index_cast %120 : i32 to index
      %c0_46 = arith.constant 0 : index
      %130 = vector.load %arg19[%129, %c0_46] : memref<128x128xf32, #tpu.memory_space<vmem>>, vector<1x128xf32>
      %131 = arith.addf %128, %130 : vector<1x128xf32>
      %cst_47 = arith.constant 0.000000e+00 : f32
      %132 = vector.broadcast %cst_47 : f32 to vector<1x128xf32>
      %133 = arith.maximumf %131, %132 : vector<1x128xf32>
      %134 = arith.index_cast %126 : i32 to index
      %c0_48 = arith.constant 0 : index
      %135 = vector.load %arg18[%134, %c0_48] : memref<24x128xf32, #tpu.memory_space<vmem>>, vector<1x128xf32>
      %136 = arith.addf %135, %133 : vector<1x128xf32>
      %137 = arith.index_cast %126 : i32 to index
      %c0_49 = arith.constant 0 : index
      %138 = vector.load %arg18[%137, %c0_49] : memref<24x128xf32, #tpu.memory_space<vmem>>, vector<1x128xf32>
      tpu.vector_store %arg18[%137, %c0_49], %136 {strides = array<i32>} : memref<24x128xf32, #tpu.memory_space<vmem>>, vector<1x128xf32>,
      %c6_i32 = arith.constant 6 : i32
      %139 = arith.addi %24, %c6_i32 : i32
      %140 = arith.addi %14, %139 : i32
      %141 = arith.index_cast %140 : i32 to index
      %142 = memref.load %arg2[%141] : memref<128xi32, #tpu.memory_space<smem>>
      %143 = arith.addi %14, %139 : i32
      %144 = arith.index_cast %143 : i32 to index
      %145 = memref.load %arg3[%144] : memref<128xi32, #tpu.memory_space<smem>>
      %146 = arith.index_cast %142 : i32 to index
      %c0_50 = arith.constant 0 : index
      %147 = vector.load %arg17[%146, %c0_50] : memref<24x128xf32, #tpu.memory_space<vmem>>, vector<1x128xf32>
      %148 = arith.index_cast %139 : i32 to index
      %c0_51 = arith.constant 0 : index
      %149 = vector.load %arg19[%148, %c0_51] : memref<128x128xf32, #tpu.memory_space<vmem>>, vector<1x128xf32>
      %150 = arith.addf %147, %149 : vector<1x128xf32>
      %cst_52 = arith.constant 0.000000e+00 : f32
      %151 = vector.broadcast %cst_52 : f32 to vector<1x128xf32>
      %152 = arith.maximumf %150, %151 : vector<1x128xf32>
      %153 = arith.index_cast %145 : i32 to index
      %c0_53 = arith.constant 0 : index
      %154 = vector.load %arg18[%153, %c0_53] : memref<24x128xf32, #tpu.memory_space<vmem>>, vector<1x128xf32>
      %155 = arith.addf %154, %152 : vector<1x128xf32>
      %156 = arith.index_cast %145 : i32 to index
      %c0_54 = arith.constant 0 : index
      %157 = vector.load %arg18[%156, %c0_54] : memref<24x128xf32, #tpu.memory_space<vmem>>, vector<1x128xf32>
      tpu.vector_store %arg18[%156, %c0_54], %155 {strides = array<i32>} : memref<24x128xf32, #tpu.memory_space<vmem>>, vector<1x128xf32>,
      %c7_i32 = arith.constant 7 : i32
      %158 = arith.addi %24, %c7_i32 : i32
      %159 = arith.addi %14, %158 : i32
      %160 = arith.index_cast %159 : i32 to index
      %161 = memref.load %arg2[%160] : memref<128xi32, #tpu.memory_space<smem>>
      %162 = arith.addi %14, %158 : i32
      %163 = arith.index_cast %162 : i32 to index
      %164 = memref.load %arg3[%163] : memref<128xi32, #tpu.memory_space<smem>>
      %165 = arith.index_cast %161 : i32 to index
      %c0_55 = arith.constant 0 : index
      %166 = vector.load %arg17[%165, %c0_55] : memref<24x128xf32, #tpu.memory_space<vmem>>, vector<1x128xf32>
      %167 = arith.index_cast %158 : i32 to index
      %c0_56 = arith.constant 0 : index
      %168 = vector.load %arg19[%167, %c0_56] : memref<128x128xf32, #tpu.memory_space<vmem>>, vector<1x128xf32>
      %169 = arith.addf %166, %168 : vector<1x128xf32>
      %cst_57 = arith.constant 0.000000e+00 : f32
      %170 = vector.broadcast %cst_57 : f32 to vector<1x128xf32>
      %171 = arith.maximumf %169, %170 : vector<1x128xf32>
      %172 = arith.index_cast %164 : i32 to index
      %c0_58 = arith.constant 0 : index
      %173 = vector.load %arg18[%172, %c0_58] : memref<24x128xf32, #tpu.memory_space<vmem>>, vector<1x128xf32>
      %174 = arith.addf %173, %171 : vector<1x128xf32>
      %175 = arith.index_cast %164 : i32 to index
      %c0_59 = arith.constant 0 : index
      %176 = vector.load %arg18[%175, %c0_59] : memref<24x128xf32, #tpu.memory_space<vmem>>, vector<1x128xf32>
      tpu.vector_store %arg18[%175, %c0_59], %174 {strides = array<i32>} : memref<24x128xf32, #tpu.memory_space<vmem>>, vector<1x128xf32>,
    }
    %c16_i32_12 = arith.constant 16 : i32
    %c0_i32_13 = arith.constant 0 : i32
    %16 = arith.cmpi eq, %arg1, %c0_i32_13 : i32
    %17 = arith.extui %16 : i1 to i32
    %c0_i32_14 = arith.constant 0 : i32
    %18 = arith.cmpi ne, %17, %c0_i32_14 : i32
    scf.if %18 {
      %24 = arith.index_cast %arg0 : i32 to index
      %25 = memref.load %arg10[%24] : memref<2xf32, #tpu.memory_space<smem>>
      %cst_18 = arith.constant 1.000000e+00 : f32
      %26 = arith.addf %cst_18, %25 : f32
      %c0_19 = arith.constant 0 : index
      %c0_20 = arith.constant 0 : index
      %27 = vector.load %arg17[%c0_19, %c0_20] : memref<24x128xf32, #tpu.memory_space<vmem>>, vector<24x128xf32>
      %28 = vector.broadcast %26 : f32 to vector<24x128xf32>
      %29 = arith.mulf %28, %27 : vector<24x128xf32>
      %c0_21 = arith.constant 0 : index
      %c0_22 = arith.constant 0 : index
      %30 = vector.load %arg18[%c0_21, %c0_22] : memref<24x128xf32, #tpu.memory_space<vmem>>, vector<24x128xf32>
      %31 = arith.addf %29, %30 : vector<24x128xf32>
      %32 = arith.truncf %31 : vector<24x128xf32> to vector<24x128xbf16>
      %c0_23 = arith.constant 0 : index
      %c0_24 = arith.constant 0 : index
      %c0_25 = arith.constant 0 : index
      %33 = vector.load %arg8[%c0_23, %c0_24, %c0_25] : memref<1x128x128xbf16, #tpu.memory_space<vmem>>, vector<1x128x128xbf16>
      %34 = vector.shape_cast %33 : vector<1x128x128xbf16> to vector<128x128xbf16>
      %cst_26 = arith.constant dense<0.000000e+00> : vector<24x128xf32>
      %35 = tpu.matmul %32, %34, %cst_26 {dimension_numbers = #tpu.dot_dimension_numbers<[1], [0], [0], [1], [0, 0, 1, 1], [], []>} : vector<24x128xbf16>, vector<128x128xbf16>, vector<24x128xf32> -> vector<24x128xf32>
      %c0_27 = arith.constant 0 : index
      %c0_28 = arith.constant 0 : index
      %c0_29 = arith.constant 0 : index
      %36 = vector.load %arg9[%c0_27, %c0_28, %c0_29] : memref<1x1x128xf32, #tpu.memory_space<vmem>>, vector<1x1x128xf32>
      %37 = vector.shape_cast %36 : vector<1x1x128xf32> to vector<1x128xf32>
      %38 = vector.broadcast %37 : vector<1x128xf32> to vector<24x128xf32>
      %39 = arith.addf %35, %38 : vector<24x128xf32>
      %c0_i32_30 = arith.constant 0 : i32
      %40 = arith.cmpi eq, %arg0, %c0_i32_30 : i32
      %cst_31 = arith.constant 0.000000e+00 : f32
      %41 = vector.broadcast %cst_31 : f32 to vector<24x128xf32>
      %42 = arith.maximumf %39, %41 : vector<24x128xf32>
      %43 = arith.select %40, %42, %39 : vector<24x128xf32>
      %c0_32 = arith.constant 0 : index
      %c0_33 = arith.constant 0 : index
      %44 = vector.load %arg17[%c0_32, %c0_33] : memref<24x128xf32, #tpu.memory_space<vmem>>, vector<24x128xf32>
      tpu.vector_store %arg17[%c0_32, %c0_33], %43 {strides = array<i32>} : memref<24x128xf32, #tpu.memory_space<vmem>>, vector<24x128xf32>,
      %cst_34 = arith.constant 0.000000e+00 : f32
      %45 = vector.broadcast %cst_34 : f32 to vector<24x128xf32>
      %c0_35 = arith.constant 0 : index
      %c0_36 = arith.constant 0 : index
      %46 = vector.load %arg18[%c0_35, %c0_36] : memref<24x128xf32, #tpu.memory_space<vmem>>, vector<24x128xf32>
      tpu.vector_store %arg18[%c0_35, %c0_36], %45 {strides = array<i32>} : memref<24x128xf32, #tpu.memory_space<vmem>>, vector<24x128xf32>,
    } else {
    }
    %c0_i32_15 = arith.constant 0 : i32
    %19 = arith.cmpi eq, %arg1, %c0_i32_15 : i32
    %c1_i32_16 = arith.constant 1 : i32
    %20 = arith.cmpi eq, %arg0, %c1_i32_16 : i32
    %21 = arith.andi %19, %20 : i1
    %22 = arith.extui %21 : i1 to i32
    %c0_i32_17 = arith.constant 0 : i32
    %23 = arith.cmpi ne, %22, %c0_i32_17 : i32
    scf.if %23 {
      %c0_18 = arith.constant 0 : index
      %c0_19 = arith.constant 0 : index
      %24 = vector.load %arg11[%c0_18, %c0_19] : memref<2x24xf32, #tpu.memory_space<vmem>>, vector<2x24xf32>
      %c0_20 = arith.constant 0 : index
      %c0_21 = arith.constant 0 : index
      %25 = vector.load %arg17[%c0_20, %c0_21] : memref<24x128xf32, #tpu.memory_space<vmem>>, vector<24x128xf32>
      %cst_22 = arith.constant dense<0.000000e+00> : vector<2x128xf32>
      %26 = tpu.matmul %24, %25, %cst_22 {dimension_numbers = #tpu.dot_dimension_numbers<[1], [0], [0], [1], [0, 0, 1, 1], [], []>} : vector<2x24xf32>, vector<24x128xf32>, vector<2x128xf32> -> vector<2x128xf32>
      %c0_23 = arith.constant 0 : index
      %c0_24 = arith.constant 0 : index
      %27 = vector.load %arg12[%c0_23, %c0_24] : memref<128x128xf32, #tpu.memory_space<vmem>>, vector<128x128xf32>
      %cst_25 = arith.constant dense<0.000000e+00> : vector<2x128xf32>
      %28 = tpu.matmul %26, %27, %cst_25 {dimension_numbers = #tpu.dot_dimension_numbers<[1], [0], [0], [1], [0, 0, 1, 1], [], []>} : vector<2x128xf32>, vector<128x128xf32>, vector<2x128xf32> -> vector<2x128xf32>
      %c0_26 = arith.constant 0 : index
      %c0_27 = arith.constant 0 : index
      %29 = vector.load %arg13[%c0_26, %c0_27] : memref<1x128xf32, #tpu.memory_space<vmem>>, vector<1x128xf32>
      %30 = vector.broadcast %29 : vector<1x128xf32> to vector<2x128xf32>
      %31 = arith.addf %28, %30 : vector<2x128xf32>
      %cst_28 = arith.constant 0.000000e+00 : f32
      %32 = vector.broadcast %cst_28 : f32 to vector<2x128xf32>
      %33 = arith.maximumf %31, %32 : vector<2x128xf32>
      %c0_29 = arith.constant 0 : index
      %c0_30 = arith.constant 0 : index
      %34 = vector.load %arg14[%c0_29, %c0_30] : memref<128x128xf32, #tpu.memory_space<vmem>>, vector<128x128xf32>
      %cst_31 = arith.constant dense<0.000000e+00> : vector<2x128xf32>
      %35 = tpu.matmul %33, %34, %cst_31 {dimension_numbers = #tpu.dot_dimension_numbers<[1], [0], [0], [1], [0, 0, 1, 1], [], []>} : vector<2x128xf32>, vector<128x128xf32>, vector<2x128xf32> -> vector<2x128xf32>
      %c0_32 = arith.constant 0 : index
      %c0_33 = arith.constant 0 : index
      %36 = vector.load %arg15[%c0_32, %c0_33] : memref<1x128xf32, #tpu.memory_space<vmem>>, vector<1x128xf32>
      %37 = vector.broadcast %36 : vector<1x128xf32> to vector<2x128xf32>
      %38 = arith.addf %35, %37 : vector<2x128xf32>
      %39 = arith.negf %38 : vector<2x128xf32>
      %40 = math.exp %39 : vector<2x128xf32>
      %cst_34 = arith.constant 1.000000e+00 : f32
      %41 = vector.broadcast %cst_34 : f32 to vector<2x128xf32>
      %42 = arith.addf %41, %40 : vector<2x128xf32>
      %43 = arith.divf %41, %42 : vector<2x128xf32>
      %c0_35 = arith.constant 0 : index
      %c0_36 = arith.constant 0 : index
      %44 = vector.load %arg16[%c0_35, %c0_36] : memref<2x128xf32, #tpu.memory_space<vmem>>, vector<2x128xf32>
      tpu.vector_store %arg16[%c0_35, %c0_36], %43 {strides = array<i32>} : memref<2x128xf32, #tpu.memory_space<vmem>>, vector<2x128xf32>,
    } else {
    }
    return
  }
  func.func @transform_0(%arg0: i32, %arg1: i32, %arg2: memref<128xi32, #tpu.memory_space<smem>>, %arg3: memref<128xi32, #tpu.memory_space<smem>>) -> (i32, i32) {
    %c0_i32 = arith.constant 0 : i32
    %c0_i32_0 = arith.constant 0 : i32
    return %arg1, %c0_i32 : i32, i32
  }
  func.func @transform_1(%arg0: i32, %arg1: i32, %arg2: memref<128xi32, #tpu.memory_space<smem>>, %arg3: memref<128xi32, #tpu.memory_space<smem>>) -> (i32, i32) {
    %c0_i32 = arith.constant 0 : i32
    %c0_i32_0 = arith.constant 0 : i32
    %c0_i32_1 = arith.constant 0 : i32
    return %c0_i32, %c0_i32_0 : i32, i32
  }
  func.func @transform_2(%arg0: i32, %arg1: i32, %arg2: memref<128xi32, #tpu.memory_space<smem>>, %arg3: memref<128xi32, #tpu.memory_space<smem>>) -> (i32, i32, i32) {
    %c0_i32 = arith.constant 0 : i32
    %c0_i32_0 = arith.constant 0 : i32
    %c0_i32_1 = arith.constant 0 : i32
    return %arg0, %c0_i32, %c0_i32_0 : i32, i32, i32
  }
  func.func @transform_3(%arg0: i32, %arg1: i32, %arg2: memref<128xi32, #tpu.memory_space<smem>>, %arg3: memref<128xi32, #tpu.memory_space<smem>>) -> (i32, i32, i32) {
    %c0_i32 = arith.constant 0 : i32
    %c0_i32_0 = arith.constant 0 : i32
    %c0_i32_1 = arith.constant 0 : i32
    return %arg0, %c0_i32, %c0_i32_0 : i32, i32, i32
  }
  func.func @transform_4(%arg0: i32, %arg1: i32, %arg2: memref<128xi32, #tpu.memory_space<smem>>, %arg3: memref<128xi32, #tpu.memory_space<smem>>) -> (i32, i32, i32) {
    %c0_i32 = arith.constant 0 : i32
    %c0_i32_0 = arith.constant 0 : i32
    %c0_i32_1 = arith.constant 0 : i32
    return %arg0, %c0_i32, %c0_i32_0 : i32, i32, i32
  }
  func.func @transform_5(%arg0: i32, %arg1: i32, %arg2: memref<128xi32, #tpu.memory_space<smem>>, %arg3: memref<128xi32, #tpu.memory_space<smem>>) -> (i32, i32, i32) {
    %c0_i32 = arith.constant 0 : i32
    %c0_i32_0 = arith.constant 0 : i32
    %c0_i32_1 = arith.constant 0 : i32
    return %arg0, %c0_i32, %c0_i32_0 : i32, i32, i32
  }
  func.func @transform_6(%arg0: i32, %arg1: i32, %arg2: memref<128xi32, #tpu.memory_space<smem>>, %arg3: memref<128xi32, #tpu.memory_space<smem>>) -> i32 {
    %c0_i32 = arith.constant 0 : i32
    %c0_i32_0 = arith.constant 0 : i32
    return %c0_i32 : i32
  }
  func.func @transform_7(%arg0: i32, %arg1: i32, %arg2: memref<128xi32, #tpu.memory_space<smem>>, %arg3: memref<128xi32, #tpu.memory_space<smem>>) -> (i32, i32) {
    %c0_i32 = arith.constant 0 : i32
    %c0_i32_0 = arith.constant 0 : i32
    %c0_i32_1 = arith.constant 0 : i32
    return %c0_i32, %c0_i32_0 : i32, i32
  }
  func.func @transform_8(%arg0: i32, %arg1: i32, %arg2: memref<128xi32, #tpu.memory_space<smem>>, %arg3: memref<128xi32, #tpu.memory_space<smem>>) -> (i32, i32) {
    %c0_i32 = arith.constant 0 : i32
    %c0_i32_0 = arith.constant 0 : i32
    %c0_i32_1 = arith.constant 0 : i32
    return %c0_i32, %c0_i32_0 : i32, i32
  }
  func.func @transform_9(%arg0: i32, %arg1: i32, %arg2: memref<128xi32, #tpu.memory_space<smem>>, %arg3: memref<128xi32, #tpu.memory_space<smem>>) -> (i32, i32) {
    %c0_i32 = arith.constant 0 : i32
    %c0_i32_0 = arith.constant 0 : i32
    %c0_i32_1 = arith.constant 0 : i32
    return %c0_i32, %c0_i32_0 : i32, i32
  }
  func.func @transform_10(%arg0: i32, %arg1: i32, %arg2: memref<128xi32, #tpu.memory_space<smem>>, %arg3: memref<128xi32, #tpu.memory_space<smem>>) -> (i32, i32) {
    %c0_i32 = arith.constant 0 : i32
    %c0_i32_0 = arith.constant 0 : i32
    %c0_i32_1 = arith.constant 0 : i32
    return %c0_i32, %c0_i32_0 : i32, i32
  }
  func.func @transform_11(%arg0: i32, %arg1: i32, %arg2: memref<128xi32, #tpu.memory_space<smem>>, %arg3: memref<128xi32, #tpu.memory_space<smem>>) -> (i32, i32) {
    %c0_i32 = arith.constant 0 : i32
    %c0_i32_0 = arith.constant 0 : i32
    %c0_i32_1 = arith.constant 0 : i32
    return %c0_i32, %c0_i32_0 : i32, i32
  }
  func.func @transform_12(%arg0: i32, %arg1: i32, %arg2: memref<128xi32, #tpu.memory_space<smem>>, %arg3: memref<128xi32, #tpu.memory_space<smem>>) -> (i32, i32) {
    %c0_i32 = arith.constant 0 : i32
    %c0_i32_0 = arith.constant 0 : i32
    %c0_i32_1 = arith.constant 0 : i32
    return %c0_i32, %c0_i32_0 : i32, i32
  }
}

</mosaic_0001>

<bundles_post_ra>
// kernel: tpu_custom_call.1
= control target key start
LH: loop header
LB: loop body
LE: loop exit
PB: predicated region body
PF: predicated region fallthrough
CT: control target
= control target key end

     0   :  { %s2531_s0 = inlined_call_operand.vmem [shape: s32[128], index: 0, kind: input, shape index: {}]   ;;  %s2532_s2 = inlined_call_operand.vmem [shape: bf16[128,8], index: 2, kind: input, shape index: {}]   ;;  %s2533_s3 = inlined_call_operand.vmem [shape: f32[24,128], index: 3, kind: input, shape index: {}]   ;;  %s2534_s4 = inlined_call_operand.vmem [shape: bf16[2,8,128], index: 4, kind: input, shape index: {}]   ;;  %s2535_s5 = inlined_call_operand.vmem [shape: f32[2,1,128], index: 5, kind: input, shape index: {}]   ;;  %s2536_s6 = inlined_call_operand.hbm [shape: bf16[2,128,128], index: 6, kind: input, shape index: {}]   ;;  %s2537_s7 = inlined_call_operand.vmem [shape: f32[2,1,128], index: 7, kind: input, shape index: {}]   ;;  %s2538_s8 = inlined_call_operand.vmem [shape: f32[2], index: 8, kind: input, shape index: {}]   ;;  %s2539_s9 = inlined_call_operand.vmem [shape: f32[2,24], index: 9, kind: input, shape index: {}]   ;;  %s2540_s10 = inlined_call_operand.hbm [shape: f32[128,128], index: 10, kind: input, shape index: {}]   ;;  %s2541_s11 = inlined_call_operand.vmem [shape: f32[1,128], index: 11, kind: input, shape index: {}]   ;;  %s2542_s12 = inlined_call_operand.hbm [shape: f32[128,128], index: 12, kind: input, shape index: {}]   ;;  %s2543_s13 = inlined_call_operand.vmem [shape: f32[1,128], index: 13, kind: input, shape index: {}]   ;;  %s2544_s14 = inlined_call_operand.hbm [shape: f32[2,128], index: 14, kind: output, shape index: {}]   ;;  %s2545_s1 = inlined_call_operand.vmem [shape: s32[128], index: 1, kind: input, shape index: {}]  }
   0x1   :  { %2552 = sst [smem:[#allocation23_spill]] %s2532_s2  ;;  %s19_s15 = sshll.u32 %s2531_s0, 4  ;;  %s20_s15 = int_to_ptr.vmem [resolvable:$true] %s19_s15 }
   0x2   :  { %2553 = sst [smem:[#allocation24_spill]] %s2533_s3  ;;  %s23_s18 = sshll.u32 %s2545_s1, 4  ;;  %s24_s18 = int_to_ptr.vmem [resolvable:$true] %s23_s18 }
   0x3   :  { %2554 = sst [smem:[#allocation25_spill]] %s2538_s8  ;;  %s1889_s19 = scalar_lea.vmem %s20_s15, 16 }
   0x4   :  { %2555 = sst [smem:[#allocation26_spill]] %s2540_s10  ;;  %p1890_p0 = scmp.ne.s32.totalorder %s20_s15, %s1889_s19 }
   0x5   :  { %2556 = sst [smem:[#allocation27_spill]] %s2542_s12  ;;  %p1894_p1 = scmp.lt.s32.totalorder %s20_s15, %s20_s15 }
   0x6   :  { %2557 = sst [smem:[#allocation28_spill]] %s2544_s14  ;;  %p1895_p2 = scmp.lt.s32.totalorder %s1889_s19, %s1889_s19 }
   0x8   :  { %p1896_p3 = por %p1895_p2, %p1894_p1 }
   0xa   :  { %p1897_p4 = pnand %p1896_p3, %p1890_p0 }
   0xc   :  { %1900 = shalt.err (!%p1897_p4)  }
   0xd   :  { %s2106_s20 = smov [#allocation6]   ;;  %s1901_s21 = scalar_lea.vmem %s24_s18, 16 }
   0xe   :  { %22 = dma.vmem_to_smem %s20_s15, 16, %s2106_s20, [#allocation5] }
   0xf   :  { %p1902_p5 = scmp.ne.s32.totalorder %s24_s18, %s1901_s21  ;;  %p1906_p6 = scmp.lt.s32.totalorder %s24_s18, %s24_s18 }
  0x10   :  { %p1907_p7 = scmp.lt.s32.totalorder %s1901_s21, %s1901_s21 }
  0x12   :  { %p1908_p8 = por %p1907_p7, %p1906_p6 }
  0x14   :  { %p1909_p9 = pnand %p1908_p8, %p1902_p5 }
  0x16   :  { %1912 = shalt.err (!%p1909_p9)  }
  0x17   :  { %s2107_s0 = smov [#allocation7]  }
  0x18   :  { %26 = dma.vmem_to_smem %s24_s18, 16, %s2107_s0, [#allocation5] }
  0x19   :  { %2060 = dma.done.wait [#allocation5], 32 }
  0x1a   :  { %2061 = vsyncadd [#allocation5], 4294967264 }
  0x1b   :  { %28 = sfence }
  0x1c   :  { %29 = vsyncpa [#allocation9], 0 }
  0x1d   :  { %31 = vsyncpa [#allocation9 + $0x1], 0 }
  0x1e   :  { %32 = vsyncpa [#allocation11], 0 }
  0x1f   :  { %33 = vsyncpa [#allocation14], 0 }
  0x20   :  { %34 = vsyncpa [#allocation10], 0  ;;  %s2202_s1 = smov 0   ;;  %s2204_s22 = smov 0  }
  0x21   :  { %s2206_s23 = smov 0   ;;  %s2208_s24 = smov 0  }
  0x22   :  { %s2210_s25 = smov 0   ;;  %s2212_s26 = smov 0  }
  0x23 LB: > { %s2548_s27 = sadd.s32 4294967295, %s2100_s26   ;;  %p171_p10 = scmp.ne.s32.totalorder %s2084_s22, %s2080_s1  ;;  %s2100_s26 = sphi %s2212_s26, %s40_s26   ;;  %s2096_s25 = sphi %s2210_s25, %s2581_s25   ;;  %s2092_s24 = sphi %s2208_s24, %s2580_s24   ;;  %s2088_s23 = sphi %s2206_s23, %s2579_s23   ;;  %s2084_s22 = sphi %s2204_s22, %s2578_s22   ;;  %s2080_s1 = sphi %s2202_s1, %s2577_s1  }
  0x24   : > { %p2234_p11 = scmp.eq.s32.totalorder %s2548_s27, 0  ;;  %p1514_p12 = scmp.ge.s32.totalorder %s2100_s26, 1 }
  0x25   : > { %p355_p13 = scmp.lt.s32.totalorder %s2100_s26, 3  ;;  %s2108_s15 = smov [#allocation13]  }
  0x26   : > { %s2558_s28 = scalar_select %p2234_p11, 1, 0 }
  0x27   : > { %p2242_p0 = por %p2234_p11, %p171_p10  ;;  %p2246_p1 = pnand %p1514_p12, %p355_p13 }
  0x28   : > { %s393_s16 = sshll.u32 %s2108_s15, 4  ;;  %s2562_s8 = sld [smem:[#allocation25_spill]]  ;;  %s394_s16 = int_to_ptr.vmem [resolvable:$true] %s393_s16 }
  0x29   : > { %s2559_s29 = scalar_select %p2242_p0, 1, 0 }
  0x2a   : > { %p1776_p2 = pneg %p2246_p1  ;;  %s1924_s21 = scalar_lea.vmem %s394_s16, 2048 }
  0x2b   : > { %p1925_p5 = scmp.ne.s32.totalorder %s394_s16, %s1924_s21  ;;  %p1932_p8 = scmp.lt.s32.totalorder %s394_s16, %s394_s16 }
  0x2c   : > { %p2254_p3 = pnand %p1776_p2, %p2234_p11  ;;  %p1933_p9 = scmp.lt.s32.totalorder %s1924_s21, %s1924_s21 }
  0x2e   : > { %s380_s20 = sshll.u32 %s2562_s8, 4  ;;  %p1915_p4 = pneg %p2254_p3  ;;  %s381_s20 = int_to_ptr.vmem [resolvable:$true] %s380_s20 }
  0x2f   : > { %p1934_p10 = por %p1933_p9, %p1932_p8 }
  0x30   : > { %p1927_p6 = pnand %p1925_p5, %p1915_p4 }
  0x32   : > { %p1928_p7 = pneg %p1927_p6 }
  0x34   : > { %p1935_p12 = pnand %p1934_p10, %p1928_p7 }
  0x36   : > { %1938 = shalt.err (!%p1935_p12)
}
  0x37   : > { %s2109_s0 = smov 128   ;;  %s2110_s1 = smov 8  }
  0x38   : > { %s2563_s10 = sld [smem:[#allocation26_spill]]  ;;  %s1939_s19 = scalar_lea.vmem %s381_s20, 16 }
  0x39   : > { %p1940_p13 = scmp.ne.s32.totalorder %s381_s20, %s1939_s19  ;;  %p1947_p6 = scmp.lt.s32.totalorder %s381_s20, %s381_s20 }
  0x3a   : > { %p1948_p11 = scmp.lt.s32.totalorder %s1939_s19, %s1939_s19 }
  0x3b   : > { %p1942_p2 = pnand %p1940_p13, %p1915_p4 }
  0x3c   : > { %p1949_p8 = por %p1948_p11, %p1947_p6 }
  0x3d   : > { %p1943_p5 = pneg %p1942_p2 }
  0x3e   : > { %1782 = dma.hbm_to_vmem [thread:$0]  (!%p2254_p3), %s2563_s10, 2048, %s394_s16, [#allocation14], %s2109_s0, %s2109_s0, %s2110_s1  }
  0x3f   : > { %p1950_p7 = pnand %p1949_p8, %p1943_p5 }
  0x41   : > { %1953 = shalt.err (!%p1950_p7)
}
  0x42   : > { %s2111_s21 = smov [#allocation12]   ;;  %s2112_s27 = smov [#allocation15]  }
  0x43   : > { %1779 = dma.vmem_to_smem (!%p2254_p3), %s381_s20, 16, %s2111_s21, [#allocation11]  }
  0x44   : > { %s409_s8 = sshll.u32 %s2112_s27, 4  ;;  %s410_s8 = int_to_ptr.vmem [resolvable:$true] %s409_s8 }
  0x45   : > { %s1965_s16 = scalar_lea.vmem %s410_s8, 2048  ;;  %p1973_p13 = scmp.lt.s32.totalorder %s410_s8, %s410_s8 }
  0x46   : > { %p1966_p9 = scmp.ne.s32.totalorder %s410_s8, %s1965_s16  ;;  %p1974_p2 = scmp.lt.s32.totalorder %s1965_s16, %s1965_s16 }
  0x48   : > { %p1968_p10 = pnand %p1966_p9, %p1915_p4  ;;  %p1975_p0 = por %p1974_p2, %p1973_p13 }
  0x4a   : > { %p1969_p12 = pneg %p1968_p10 }
  0x4c   : > { %p1976_p11 = pnand %p1975_p0, %p1969_p12 }
  0x4e   : > { %1979 = shalt.err (!%p1976_p11)
}
  0x4f   : > { %s2564_s12 = sld [smem:[#allocation27_spill]]  ;;  %s52_s27 = sadd.s32 1, %s2096_s25 }
  0x50   : > { %p54_p4 = scmp.ge.s32.totalorder %s52_s27, 2  ;;  %s158_s20 = sadd.s32 1, %s2088_s23 }
  0x51   : > { %p165_p0 = scmp.ne.s32.totalorder %s2088_s23, %s2084_s22  ;;  %p166_p5 = scmp.eq.s32.totalorder %s2100_s26, 0 }
  0x52   : > { %s2583_s27 = smov (%p54_p4, %s52_s27), 0  ;;  %p1793_p8 = scmp.lt.s32.totalorder %s2100_s26, 2 }
  0x53   : > { %2565 = sst [smem:[#allocation22_spill]] %s2583_s27  ;;  %p167_p6 = por %p166_p5, %p165_p0 }
  0x54   : > { %s155_s17 = ssub.s32 %s2096_s25, %s2583_s27  ;;  %s439_s19 = sand.u32 1, %s2088_s23  }
  0x55   : > { %1785 = dma.hbm_to_vmem [thread:$0]  (!%p2254_p3), %s2564_s12, 2048, %s410_s8, [#allocation14], %s2109_s0, %s2109_s0, %s2110_s1  }
  0x56   : > { %p156_p7 = scmp.eq.s32.totalorder %s155_s17, 0  ;;  %s1520_s21 = sshll.u32 %s439_s19, 6 }
  0x57   : > { %s1580_s16 = sshll.u32 %s2096_s25, 10  ;;  %s443_s0 = scalar_lea.vmem [#allocation8], %s1520_s21 }
  0x58   : > { %s2297_s15 = scalar_select %p156_p7, %s2088_s23, %s158_s20  }
  0x59   : > { %s449_s8 = scalar_lea.hbm %s2536_s6, %s1580_s16  ;;  %s450_s1 = sshll.u32 %s443_s0, 4  ;;  %s451_s1 = int_to_ptr.vmem [resolvable:$true] %s450_s1 }
  0x5a   : > { %p2302_p3 = pnand %p1793_p8, %p167_p6  ;;  %s440_s14 = scalar_lea.sflag [#allocation9], %s439_s19 }
  0x5b   : > { %s1993_s17 = scalar_lea.vmem %s451_s1, 1024  ;;  %s2113_s20 = smov [#allocation8]  }
  0x5c   : > { %p1982_p9 = pneg %p2302_p3  ;;  %p1994_p10 = scmp.ne.s32.totalorder %s451_s1, %s1993_s17 }
  0x5d   : > { %s1998_s27 = sshll.u32 %s2113_s20, 4  ;;  %s1999_s27 = int_to_ptr.vmem [resolvable:$false] %s1998_s27 }
  0x5e   : > { %p1996_p12 = pnand %p1994_p10, %p1982_p9  ;;  %s2000_s10 = scalar_lea.vmem %s1999_s27, 2048 }
  0x5f   : > { %p2001_p2 = scmp.lt.s32.totalorder %s451_s1, %s1999_s27  ;;  %p2002_p11 = scmp.lt.s32.totalorder %s2000_s10, %s1993_s17 }
  0x60   : > { %p1997_p13 = pneg %p1996_p12 }
  0x61   : > { %p2003_p4 = por %p2002_p11, %p2001_p2 }
  0x63   : > { %p2004_p0 = pnand %p2003_p4, %p1997_p13 }
  0x65   : > { %2007 = shalt.err (!%p2004_p0)
}
  0x66   : > { %s2114_s21 = smov 64   ;;  %s2115_s16 = smov 4  }
  0x67   : > { %1789 = dma.hbm_to_vmem [thread:$0]  (!%p2302_p3), %s449_s8, 1024, %s451_s1, %s440_s14, %s2114_s21, %s2114_s21, %s2115_s16  }
  0x68   : > { %468 = sbr.rel (%p2246_p1) target bundleno = 1313 (0x521), region = 68  ;;  %s470_s19 = sand.u32 (!%p2246_p1), 1, %s2084_s22  }
  0x69   : > { %s1524_s18 = sshll.u32 (!%p2246_p1), %s470_s19, 6  ;;  %s471_s0 = scalar_lea.sflag (!%p2246_p1), [#allocation9], %s470_s19 }
  0x6a   : > { %s2313_s20 = scalar_lea.vmem (!%p2246_p1), [#allocation8], %s1524_s18  ;;  %p2567_p5 = scmp.ne.s32.totalorder (!%p2246_p1), %s2559_s29, 0 }
  0x6d   : > { %2063 = dma.done.wait (%p2567_p5), %s471_s0, 1024  }
  0x6e   : > { %2065 = vsyncadd (%p2567_p5), %s471_s0, 4294966272  ;;  %p2568_p6 = scmp.ne.s32.totalorder %s2558_s28, 0 }
  0x70   : > { %2067 = dma.done.wait (%p2568_p6), [#allocation11], 16  }
  0x71   : > { %2069 = vsyncadd (%p2568_p6), [#allocation11], 4294967280 }
  0x72   : > { %2071 = dma.done.wait (%p2568_p6), [#allocation14], 4096  }
  0x73   : > { %2073 = vsyncadd (%p2568_p6), [#allocation14], 4294963200 }
  0x74   : > { %491 = sfence }
  0x75   : > { %p544_p1 = scmp.lt.s32.totalorder %s2092_s24, 1  ;;  %p555_p8 = scmp.eq.s32.totalorder %s2092_s24, 0 }
  0x76   : > { %s2569_s3 = sld [smem:[#allocation24_spill]] (%p555_p8)  ;;  %v2116_v3 = vmov (%p555_p8), 0.0  }
  0x77   : > { %s2330_s12 = scalar_select %p544_p1, %s2092_s24, 1  ;;  %567 = vst [vmem:[#allocation3] sm:$0xff] (%p555_p8), %v2116_v3  ;;  %568 = vst [vmem:[#allocation3 + $0x8] sm:$0xff] (%p555_p8), %v2116_v3 }
  0x78   : > { %560 = sbr.rel (!%p555_p8) target bundleno = 127 (0x7f), region = 88  ;;  %569 = vst [vmem:[#allocation3 + $0x10] sm:$0xff] (%p555_p8), %v2116_v3  ;;  %570 = vst [vmem:[#allocation16] sm:$0x3] (%p555_p8), %v2116_v3 }
  0x79   : > { %s1528_s14 = sshll.u32 %s2330_s12, 2  ;;  %s550_s27 = scalar_lea.vmem %s2535_s5, %s2330_s12 }
  0x7a   : > { %s547_s28 = scalar_lea.vmem %s2534_s4, %s1528_s14 }
  0x7c   : > { %v561_v0 = vld [vmem:[%s2569_s3] sm:$0xff] (%p555_p8)  ;;  %v562_v1 = vld [vmem:[%s2569_s3 + $0x8] sm:$0xff] (%p555_p8)  ;;  %v563_v2 = vld [vmem:[%s2569_s3 + $0x10] sm:$0xff] (%p555_p8) }
  0x7d   : > { %564 = vst [vmem:[#allocation2] sm:$0xff] %v561_v0  ;;  %565 = vst [vmem:[#allocation2 + $0x8] sm:$0xff] %v562_v1 }
  0x7e   : > { %566 = vst [vmem:[#allocation2 + $0x10] sm:$0xff] %v563_v2 }
  0x7f PF: > { %v587_v4 = vld [vmem:[%s547_s28] sm:$0xf]  ;;  %vm660_vm0 = vcmask 1043456   ;;  %s2570_s2 = sld [smem:[#allocation23_spill]]  ;;  %vm635_vm1 = vcmask 64512  }
  0x80   : > { %1757 = vmatprep.subr.msk.bf16.mxu0 %vm660_vm0, %v587_v4  ;;  %v662_v6 = vsel %vm660_vm0, %v587_v4, 0  ;;  %v1530_v14 = vld [vmem:[%s550_s27] ss:$0 sm:$0xff]  ;;  %s2392_s27 = smov 0  }
  0x81   : > { %1641 = vmatpush3.bf16.msra.mxu0 %v662_v6 }
  0x85   : > { %v1869_v5 = vld [vmem:[%s2570_s2] sm:$0xff]   ;;  %v1870_v7 = vld [vmem:[%s2570_s2 + $0x8] sm:$0xff]   ;;  %v1871_v8 = vld [vmem:[%s2570_s2 + $0x10] sm:$0xff]  }
  0x86   : > { %1642 = vmatprep.mubr.msk.bf16.mxu0 %vm635_vm1, %v1869_v5  ;;  %v1872_v9 = vld [vmem:[%s2570_s2 + $0x18] sm:$0xff]   ;;  %v1873_v10 = vld [vmem:[%s2570_s2 + $0x20] sm:$0xff]   ;;  %v1874_v11 = vld [vmem:[%s2570_s2 + $0x28] sm:$0xff]  }
  0x87   : > { %1643 = vmatmul.mubr.msk.bf16.vlgmr.msra.gmra.mxu0 %vm635_vm1, %v1870_v7  ;;  %v1875_v12 = vld [vmem:[%s2570_s2 + $0x30] sm:$0xff]   ;;  %v1876_v13 = vld [vmem:[%s2570_s2 + $0x38] sm:$0xff]  }
  0x88   : > { %1646 = vmatprep.mubr.msk.bf16.mxu0 %vm635_vm1, %v1871_v8 }
  0x8f   : > { %1647 = vmatmul.mubr.msk.bf16.gmra.mxu0 %vm635_vm1, %v1872_v9 }
  0x90   : > { %1650 = vmatprep.mubr.msk.bf16.mxu0 %vm635_vm1, %v1873_v10 }
  0x97   : > { %1651 = vmatmul.mubr.msk.bf16.gmra.mxu0 %vm635_vm1, %v1874_v11 }
  0x98   : > { %1654 = vmatprep.mubr.msk.bf16.mxu0 %vm635_vm1, %v1875_v12 }
  0x9f   : > { %1655 = vmatmul.mubr.msk.bf16.gmra.mxu0 %vm635_vm1, %v1876_v13 }
 0x147   : > { %v1644_v15 = vpop.f32.mrf.mxu0 }
 0x148   : > { %v707_v16 = vadd.f32 %v1644_v15, %v1530_v14 }
 0x149   : > { %v698_v17 = vpop.f32.mrf.mxu0 }
 0x14a   : > { %763 = vst [vmem:[#allocation4 + $0x10] sm:$0xff] %v707_v16  ;;  %v699_v18 = vadd.f32 %v1530_v14, %v698_v17 }
 0x14b   : > { %v1645_v19 = vpop.f32.mrf.mxu0 }
 0x14c   : > { %761 = vst [vmem:[#allocation4] sm:$0xff] %v699_v18  ;;  %v710_v20 = vadd.f32 %v1645_v19, %v1530_v14 }
 0x14d   : > { %v701_v21 = vpop.f32.mrf.mxu0 }
 0x14e   : > { %764 = vst [vmem:[#allocation4 + $0x18] sm:$0xff] %v710_v20  ;;  %v702_v22 = vadd.f32 %v1530_v14, %v701_v21 }
 0x14f   : > { %v1648_v23 = vpop.f32.mrf.mxu0 }
 0x150   : > { %762 = vst [vmem:[#allocation4 + $0x8] sm:$0xff] %v702_v22  ;;  %v723_v24 = vadd.f32 %v1648_v23, %v1530_v14 }
 0x151   : > { %v714_v25 = vpop.f32.mrf.mxu0 }
 0x152   : > { %767 = vst [vmem:[#allocation4 + $0x30] sm:$0xff] %v723_v24  ;;  %v715_v26 = vadd.f32 %v1530_v14, %v714_v25 }
 0x153   : > { %v1649_v27 = vpop.f32.mrf.mxu0 }
 0x154   : > { %765 = vst [vmem:[#allocation4 + $0x20] sm:$0xff] %v715_v26  ;;  %v726_v28 = vadd.f32 %v1649_v27, %v1530_v14 }
 0x155   : > { %v717_v29 = vpop.f32.mrf.mxu0 }
 0x156   : > { %768 = vst [vmem:[#allocation4 + $0x38] sm:$0xff] %v726_v28  ;;  %v718_v30 = vadd.f32 %v1530_v14, %v717_v29 }
 0x157   : > { %v1652_v31 = vpop.f32.mrf.mxu0 }
 0x158   : > { %766 = vst [vmem:[#allocation4 + $0x28] sm:$0xff] %v718_v30  ;;  %v739_v32 = vadd.f32 %v1652_v31, %v1530_v14 }
 0x159   : > { %v730_v33 = vpop.f32.mrf.mxu0 }
 0x15a   : > { %771 = vst [vmem:[#allocation4 + $0x50] sm:$0xff] %v739_v32  ;;  %v731_v34 = vadd.f32 %v1530_v14, %v730_v33 }
 0x15b   : > { %v1653_v35 = vpop.f32.mrf.mxu0 }
 0x15c   : > { %769 = vst [vmem:[#allocation4 + $0x40] sm:$0xff] %v731_v34  ;;  %v742_v36 = vadd.f32 %v1653_v35, %v1530_v14 }
 0x15d   : > { %v733_v37 = vpop.f32.mrf.mxu0 }
 0x15e   : > { %772 = vst [vmem:[#allocation4 + $0x58] sm:$0xff] %v742_v36  ;;  %v734_v38 = vadd.f32 %v1530_v14, %v733_v37 }
 0x15f   : > { %v1656_v39 = vpop.f32.mrf.mxu0 }
 0x160   : > { %770 = vst [vmem:[#allocation4 + $0x48] sm:$0xff] %v734_v38  ;;  %v755_v40 = vadd.f32 %v1656_v39, %v1530_v14 }
 0x161   : > { %v746_v41 = vpop.f32.mrf.mxu0 }
 0x162   : > { %775 = vst [vmem:[#allocation4 + $0x70] sm:$0xff] %v755_v40  ;;  %v747_v42 = vadd.f32 %v1530_v14, %v746_v41 }
 0x163   : > { %v1657_v43 = vpop.f32.mrf.mxu0 }
 0x164   : > { %773 = vst [vmem:[#allocation4 + $0x60] sm:$0xff] %v747_v42  ;;  %v758_v44 = vadd.f32 %v1657_v43, %v1530_v14 }
 0x165   : > { %v749_v45 = vpop.f32.mrf.mxu0 }
 0x166   : > { %776 = vst [vmem:[#allocation4 + $0x78] sm:$0xff] %v758_v44  ;;  %v750_v46 = vadd.f32 %v1530_v14, %v749_v45 }
 0x168   : > { %774 = vst [vmem:[#allocation4 + $0x68] sm:$0xff] %v750_v46 }
 0x169 LB: >> { %s2398_s28 = sshll.u32 %s2104_s27, 3  ;;  %s783_s27 = sadd.s32 1, %s2104_s27   ;;  %s2104_s27 = sphi %s2392_s27, %s783_s27  }
 0x16a   : >> { %s786_s19 = sld [smem:[#allocation6 + %s2398_s28]]  ;;  %s798_s0 = sadd.s32 1, %s2398_s28 }
 0x16b   : >> { %s787_s18 = sld [smem:[#allocation7 + %s2398_s28]]  ;;  %s2404_s30 = scalar_lea.vmem [#allocation4], %s2398_s28 }
 0x16c   : >> { %s800_s29 = sld [smem:[#allocation6 + %s798_s0]]  ;;  %s812_s8 = sadd.s32 2, %s2398_s28 }
 0x16d   : >> { %s801_s17 = sld [smem:[#allocation7 + %s798_s0]]  ;;  %s2551_s21 = sadd.s32 7, %s2398_s28 }
 0x16e   : >> { %s814_s10 = sld [smem:[#allocation6 + %s812_s8]]  ;;  %p780_p7 = scmp.ge.s32.totalorder %s783_s27, 16  }
 0x16f   : >> { %v791_v47 = vld [vmem:[%s2404_s30] sm:$0x1]  ;;  %v1549_v53 = vld [vmem:[%s2404_s30 + $0x1] sm:$0x1]  ;;  %s815_s2 = sld [smem:[#allocation7 + %s812_s8]]  ;;  %v1877_v31 = vld [vmem:[%s2313_s20 + $0x38] sm:$0xff] (%p780_p7)  }
 0x170   : >> { %s788_s14 = scalar_lea.vmem [#allocation2], %s786_s19  ;;  %s884_s19 = sld [smem:[#allocation6 + %s2551_s21]]  ;;  %v1551_v57 = vld [vmem:[%s2404_s30 + $0x2] sm:$0x1]  ;;  %v1561_v60 = vld [vmem:[%s2404_s30 + $0x7] sm:$0x1]  ;;  %1658 = vmatprep.subr.bf16.mxu1 (%p780_p7), %v1877_v31 }
 0x171   : >> { %v789_v48 = vld [vmem:[%s788_s14] sm:$0x1]  ;;  %s794_s1 = scalar_lea.vmem [#allocation3], %s787_s18  ;;  %s826_s14 = sadd.s32 3, %s2398_s28  ;;  %v1553_v4 = vld [vmem:[%s2404_s30 + $0x3] sm:$0x1]  ;;  %1659 = vmatpush3.bf16.msra.mxu1 (%p780_p7), %v1877_v31 }
 0x172   : >> { %v792_v49 = vadd.f32 %v791_v47, %v789_v48  ;;  %v795_v50 = vld [vmem:[%s794_s1] sm:$0x1]  ;;  %s802_s16 = scalar_lea.vmem [#allocation2], %s800_s29  ;;  %s828_s18 = sld [smem:[#allocation6 + %s826_s14]]  ;;  %v1555_v10 = vld [vmem:[%s2404_s30 + $0x4] sm:$0x1] }
 0x173   : >> { %v803_v52 = vld [vmem:[%s802_s16] sm:$0x1]  ;;  %s808_s3 = scalar_lea.vmem [#allocation3], %s801_s17  ;;  %s829_s16 = sld [smem:[#allocation7 + %s826_s14]]  ;;  %v1557_v16 = vld [vmem:[%s2404_s30 + $0x5] sm:$0x1] }
 0x174   : >> { %v793_v51 = vmax.f32 %v792_v49, 0.0  ;;  %v806_v55 = vadd.f32 %v1549_v53, %v803_v52  ;;  %s816_s0 = scalar_lea.vmem [#allocation2], %s814_s10  ;;  %s854_s10 = sadd.s32 5, %s2398_s28  ;;  %v1559_v22 = vld [vmem:[%s2404_s30 + $0x6] sm:$0x1]  ;;  %v1879_v33 = vld [vmem:[%s2313_s20 + $0x28] sm:$0xff] (%p780_p7)  }
 0x175   : >> { %v817_v59 = vld [vmem:[%s816_s0] sm:$0x1]  ;;  %s822_s8 = scalar_lea.vmem [#allocation3], %s815_s2  ;;  %s868_s2 = sadd.s32 6, %s2398_s28  ;;  %v1880_v34 = vld [vmem:[%s2313_s20 + $0x20] sm:$0xff] (%p780_p7)   ;;  %v902_v36 = vld [vmem:[#allocation2 + $0x8] sm:$0xff] (%p780_p7) }
 0x176   : >> { %v796_v54 = vadd.f32 %v795_v50, %v793_v51  ;;  %v807_v56 = vmax.f32 %v806_v55, 0.0  ;;  %s886_s29 = scalar_lea.vmem [#allocation2], %s884_s19  ;;  %v820_v63 = vadd.f32 %v1551_v57, %v817_v59  ;;  %s857_s14 = sld [smem:[#allocation7 + %s854_s10]]  ;;  %v1878_v32 = vld [vmem:[%s2313_s20 + $0x30] sm:$0xff] (%p780_p7)   ;;  %v2117_v42 = vmov (%p780_p7), 0.0   ;;  %v1881_v46 = vld [vmem:[%s2313_s20 + $0x18] sm:$0xff] (%p780_p7)  }
 0x177   : >> { %v887_v62 = vld [vmem:[%s886_s29] sm:$0x1]  ;;  %1660 = vmatprep.subr.bf16.mxu1 (%p780_p7), %v1878_v32  ;;  %v903_v49 = vld [vmem:[#allocation2 + $0x10] sm:$0xff] (%p780_p7)  ;;  %v1883_v50 = vld [vmem:[%s2313_s20 + $0x8] sm:$0xff] (%p780_p7)   ;;  %p1050_p3 = scmp.eq.s32.totalorder (%p780_p7), %s2092_s24, 1 }
 0x178   : >> { %797 = vst [vmem:[%s794_s1] sm:$0x1] %v796_v54  ;;  %v890_v0 = vadd.f32 %v1561_v60, %v887_v62  ;;  %s840_s1 = sadd.s32 4, %s2398_s28  ;;  %v821_v1 = vmax.f32 %v820_v63, 0.0  ;;  %s830_s17 = scalar_lea.vmem [#allocation2], %s828_s18  ;;  %1661 = vmatpush3.bf16.msra.mxu1 (%p780_p7), %v1878_v32  ;;  %v901_v35 = vld [vmem:[#allocation2] sm:$0xff] (%p780_p7)  ;;  %v1884_v52 = vld [vmem:[%s2313_s20] sm:$0xff] (%p780_p7)  }
 0x179   : >> { %s842_s21 = sld [smem:[#allocation6 + %s840_s1]]  ;;  %v831_v3 = vld [vmem:[%s830_s17] sm:$0x1]  ;;  %s836_s0 = scalar_lea.vmem [#allocation3], %s829_s16  ;;  %1662 = vmatprep.subr.bf16.mxu1 (%p780_p7), %v1879_v33 }
 0x17a   : >> { %v834_v6 = vadd.f32 %v1553_v4, %v831_v3  ;;  %s843_s19 = sld [smem:[#allocation7 + %s840_s1]]  ;;  %v891_v28 = vmax.f32 %v890_v0, 0.0  ;;  %v1882_v48 = vld [vmem:[%s2313_s20 + $0x10] sm:$0xff] (%p780_p7)  }
 0x17b   : >> { %s870_s18 = sld [smem:[#allocation6 + %s868_s2]] }
 0x17c   : >> { %v835_v7 = vmax.f32 %v834_v6, 0.0  ;;  %s864_s1 = scalar_lea.vmem [#allocation3], %s857_s14  ;;  %1663 = vmatpush3.bf16.msra.mxu1 (%p780_p7), %v1879_v33  ;;  %s2572_s14 = scalar_lea.vmem (%p780_p7), %s2537_s7, %s2330_s12 }
 0x17d   : > { %1664 = vmatprep.subr.bf16.mxu1 (%p780_p7), %v1880_v34  ;;  %v1562_v55 = vld [vmem:[%s2572_s14] ss:$0 sm:$0xff] (%p780_p7) }
 0x17f   : >> { %v809_v58 = vld [vmem:[%s808_s3] sm:$0x1]  ;;  %s844_s29 = scalar_lea.vmem [#allocation2], %s842_s21  ;;  %s871_s21 = sld [smem:[#allocation7 + %s868_s2]] }
 0x180   : >> { %v810_v61 = vadd.f32 %v809_v58, %v807_v56  ;;  %v845_v9 = vld [vmem:[%s844_s29] sm:$0x1]  ;;  %1665 = vmatpush3.bf16.msra.mxu1 (%p780_p7), %v1880_v34 }
 0x181   : >> { %v848_v12 = vadd.f32 %v1555_v10, %v845_v9  ;;  %s872_s16 = scalar_lea.vmem [#allocation2], %s870_s18  ;;  %1666 = vmatprep.subr.bf16.mxu1 (%p780_p7), %v1881_v46 }
 0x182   : >> { %811 = vst [vmem:[%s808_s3] sm:$0x1] %v810_v61  ;;  %s856_s3 = sld [smem:[#allocation6 + %s854_s10]]  ;;  %v873_v21 = vld [vmem:[%s872_s16] sm:$0x1]  ;;  %s2571_s10 = sadd.s32 7, %s2398_s28 }
 0x183   : >> { %v849_v13 = vmax.f32 %v848_v12, 0.0  ;;  %v876_v24 = vadd.f32 %v1559_v22, %v873_v21  ;;  %s899_s28 = sld [smem:[#allocation12 + %s2092_s24]] (%p780_p7) }
 0x184   : > { %1667 = vmatpush3.bf16.msra.mxu1 (%p780_p7), %v1881_v46 }
 0x185   : >> { %v877_v25 = vmax.f32 %v876_v24, 0.0  ;;  %1668 = vmatprep.subr.bf16.mxu1 (%p780_p7), %v1882_v48 }
 0x188   : >> { %s858_s17 = scalar_lea.vmem [#allocation2], %s856_s3  ;;  %s878_s3 = scalar_lea.vmem [#allocation3], %s871_s21  ;;  %1669 = vmatpush3.bf16.msra.mxu1 (%p780_p7), %v1882_v48 }
 0x189   : >> { %v823_v2 = vld [vmem:[%s822_s8] sm:$0x1]  ;;  %s900_s30 = sadd.f32 (%p780_p7), 1.0, %s899_s28  ;;  %1670 = vmatprep.subr.bf16.mxu1 (%p780_p7), %v1883_v50 }
 0x18a   : >> { %v824_v5 = vadd.f32 %v823_v2, %v821_v1  ;;  %v859_v15 = vld [vmem:[%s858_s17] sm:$0x1] }
 0x18b   : >> { %v862_v18 = vadd.f32 %v1557_v16, %v859_v15  ;;  %v904_v37 = vstv (%p780_p7), %s900_s30 }
 0x18c   : >> { %825 = vst [vmem:[%s822_s8] sm:$0x1] %v824_v5  ;;  %s850_s8 = scalar_lea.vmem [#allocation3], %s843_s19  ;;  %s885_s19 = sld [smem:[#allocation7 + %s2571_s10]]  ;;  %v905_v39 = vmul.f32 (%p780_p7), %v904_v37, %v901_v35  ;;  %v906_v40 = vmul.f32 (%p780_p7), %v904_v37, %v902_v36  ;;  %v907_v51 = vmul.f32 (%p780_p7), %v904_v37, %v903_v49  ;;  %1671 = vmatpush3.bf16.msra.mxu1 (%p780_p7), %v1883_v50 }
 0x18d   : >> { %v863_v19 = vmax.f32 %v862_v18, 0.0  ;;  %1672 = vmatprep.subr.bf16.mxu1 (%p780_p7), %v1884_v52 }
 0x190   : > { %1673 = vmatpush3.bf16.msra.mxu1 (%p780_p7), %v1884_v52 }
 0x193   : >> { %v837_v8 = vld [vmem:[%s836_s0] sm:$0x1] }
 0x194   : >> { %v838_v11 = vadd.f32 %v837_v8, %v835_v7 }
 0x196   : >> { %839 = vst [vmem:[%s836_s0] sm:$0x1] %v838_v11  ;;  %s892_s0 = scalar_lea.vmem [#allocation3], %s885_s19 }
 0x19d   : >> { %v851_v14 = vld [vmem:[%s850_s8] sm:$0x1] }
 0x19e   : >> { %v852_v17 = vadd.f32 %v851_v14, %v849_v13 }
 0x1a0   : >> { %853 = vst [vmem:[%s850_s8] sm:$0x1] %v852_v17 }
 0x1a7   : >> { %v865_v20 = vld [vmem:[%s864_s1] sm:$0x1] }
 0x1a8   : >> { %v866_v23 = vadd.f32 %v865_v20, %v863_v19 }
 0x1aa   : >> { %867 = vst [vmem:[%s864_s1] sm:$0x1] %v866_v23 }
 0x1b1   : >> { %v879_v26 = vld [vmem:[%s878_s3] sm:$0x1] }
 0x1b2   : >> { %v880_v27 = vadd.f32 %v879_v26, %v877_v25 }
 0x1b4   : >> { %881 = vst [vmem:[%s878_s3] sm:$0x1] %v880_v27 }
 0x1ba   : > { %782 = sbr.rel (!%p780_p7) target bundleno = 361 (0x169), region = 173 }
 0x1bb   : >> { %v893_v29 = vld [vmem:[%s892_s0] sm:$0x1] }
 0x1bc   : >> { %v894_v30 = vadd.f32 %v893_v29, %v891_v28 }
 0x1be   : >> { %895 = vst [vmem:[%s892_s0] sm:$0x1] %v894_v30 }
 0x1bf   : > { %s1038_s27 = scalar_select %p555_p8, 1, 0  ;;  %v2118_v7 = vmov (%p1050_p3), 0.0   ;;  %vm2119_vm3 = vmmov (%p1050_p3), 0   ;;  %v1148_v9 = vld [vmem:[#allocation13 + $0x78] sm:$0xff] (%p1050_p3)  ;;  %v1147_v10 = vld [vmem:[#allocation13 + $0x70] sm:$0xff] (%p1050_p3) }
 0x1c0   : > { %1678 = vmatprep.subr.mxu0 (%p1050_p3), %v2118_v7  ;;  %1684 = vmatprep.mubr.msk.f32.mxu0 (%p1050_p3), %vm2119_vm3, %v2118_v7  ;;  %v1055_v12 = vld [vmem:[%s2539_s9] sm:$0x3] (%p1050_p3)  ;;  %vm1059_vm4 = vcmask (%p1050_p3), 195584   ;;  %v1146_v13 = vld [vmem:[#allocation13 + $0x68] sm:$0xff] (%p1050_p3)  ;;  %v1145_v14 = vld [vmem:[#allocation13 + $0x60] sm:$0xff] (%p1050_p3) }
 0x1c1   : > { %v1039_v56 = vstv %s1038_s27  ;;  %1687 = vmatprep.subr.mxu1 (%p1050_p3), %v2118_v7  ;;  %v1144_v15 = vld [vmem:[#allocation13 + $0x58] sm:$0xff] (%p1050_p3)  ;;  %v1143_v16 = vld [vmem:[#allocation13 + $0x50] sm:$0xff] (%p1050_p3)  ;;  %v1142_v17 = vld [vmem:[#allocation13 + $0x48] sm:$0xff] (%p1050_p3) }
 0x1c2   : > { %vm1040_vm2 = vcmp.eq.s32.totalorder %v1039_v56, 1  ;;  %v1141_v18 = vld [vmem:[#allocation13 + $0x40] sm:$0xff] (%p1050_p3)  ;;  %v1140_v19 = vld [vmem:[#allocation13 + $0x38] sm:$0xff] (%p1050_p3)  ;;  %v1139_v20 = vld [vmem:[#allocation13 + $0x30] sm:$0xff] (%p1050_p3) }
 0x1c3   : > { %v1138_v21 = vld [vmem:[#allocation13 + $0x28] sm:$0xff] (%p1050_p3)  ;;  %v1137_v22 = vld [vmem:[#allocation13 + $0x20] sm:$0xff] (%p1050_p3)  ;;  %v1136_v23 = vld [vmem:[#allocation13 + $0x18] sm:$0xff] (%p1050_p3) }
 0x1c4   : > { %v1135_v24 = vld [vmem:[#allocation13 + $0x10] sm:$0xff] (%p1050_p3)  ;;  %v1134_v25 = vld [vmem:[#allocation13 + $0x8] sm:$0xff] (%p1050_p3)  ;;  %v1133_v26 = vld [vmem:[#allocation13] sm:$0xff] (%p1050_p3) }
 0x1c5   : > { %v908_v38 = vld [vmem:[#allocation3] sm:$0xff]  ;;  %v909_v41 = vld [vmem:[#allocation3 + $0x8] sm:$0xff]  ;;  %v910_v43 = vld [vmem:[#allocation3 + $0x10] sm:$0xff] }
 0x1c6   : > { %1047 = vst [vmem:[#allocation3] sm:$0xff] %v2117_v42  ;;  %1048 = vst [vmem:[#allocation3 + $0x8] sm:$0xff] %v2117_v42  ;;  %v911_v44 = vadd.f32 %v908_v38, %v905_v39  ;;  %v912_v45 = vadd.f32 %v909_v41, %v906_v40  ;;  %v913_v53 = vadd.f32 %v910_v43, %v907_v51  ;;  %v1242_v27 = vld [vmem:[#allocation15 + $0x78] sm:$0xff] (%p1050_p3)  ;;  %v1241_v28 = vld [vmem:[#allocation15 + $0x70] sm:$0xff] (%p1050_p3) }
 0x1c7   : > { %1049 = vst [vmem:[#allocation3 + $0x10] sm:$0xff] %v2117_v42  ;;  %v1240_v29 = vld [vmem:[#allocation15 + $0x68] sm:$0xff] (%p1050_p3)  ;;  %v1239_v30 = vld [vmem:[#allocation15 + $0x60] sm:$0xff] (%p1050_p3)  ;;  %v1238_v31 = vld [vmem:[#allocation15 + $0x58] sm:$0xff] (%p1050_p3) }
 0x1c8   : > { %v914_v47 = vpack.c.bf16 %v912_v45, %v911_v44  ;;  %v915_v54 = vpack.c.bf16 %v913_v53, %v913_v53  ;;  %v1237_v32 = vld [vmem:[#allocation15 + $0x50] sm:$0xff] (%p1050_p3)  ;;  %v1236_v33 = vld [vmem:[#allocation15 + $0x48] sm:$0xff] (%p1050_p3)  ;;  %v1235_v34 = vld [vmem:[#allocation15 + $0x40] sm:$0xff] (%p1050_p3) }
 0x1c9   : > { %v1234_v35 = vld [vmem:[#allocation15 + $0x38] sm:$0xff] (%p1050_p3)  ;;  %v1233_v36 = vld [vmem:[#allocation15 + $0x30] sm:$0xff] (%p1050_p3)  ;;  %v1232_v37 = vld [vmem:[#allocation15 + $0x28] sm:$0xff] (%p1050_p3) }
 0x1ca   : > { %1674 = vmatprep.mubr.bf16.mxu1 %v914_v47  ;;  %v1231_v38 = vld [vmem:[#allocation15 + $0x20] sm:$0xff] (%p1050_p3)  ;;  %v1230_v39 = vld [vmem:[#allocation15 + $0x18] sm:$0xff] (%p1050_p3)  ;;  %v1229_v42 = vld [vmem:[#allocation15 + $0x10] sm:$0xff] (%p1050_p3) }
 0x1cb   : > { %1675 = vmatmul.mubr.bf16.vlgmr.msra.gmra.mxu1 %v915_v54  ;;  %v1228_v43 = vld [vmem:[#allocation15 + $0x8] sm:$0xff] (%p1050_p3)  ;;  %v1227_v44 = vld [vmem:[#allocation15] sm:$0xff] (%p1050_p3)  ;;  %v1573_v45 = vld [vmem:[%s2541_s11] ss:$0 sm:$0xff] (%p1050_p3) }
 0x1cc   : > { %1688 = vmatpush3.msra.mxu1 (%p1050_p3), %v1148_v9  ;;  %1719 = vmatprep.mubr.msk.f32.mxu1 (%p1050_p3), %vm2119_vm3, %v2118_v7  ;;  %v1574_v50 = vld [vmem:[%s2543_s13] ss:$0 sm:$0xff] (%p1050_p3) }
 0x1cd   : > { %1689 = vmatprep.subr.mxu1 (%p1050_p3), %v2118_v7 }
 0x1ce   : > { %1690 = vmatpush3.msra.mxu1 (%p1050_p3), %v1147_v10 }
 0x1cf   : > { %1691 = vmatprep.subr.mxu1 (%p1050_p3), %v2118_v7 }
 0x1d0   : > { %1692 = vmatpush3.msra.mxu1 (%p1050_p3), %v1146_v13 }
 0x1d1   : > { %1693 = vmatprep.subr.mxu1 (%p1050_p3), %v2118_v7 }
 0x1d2   : > { %1694 = vmatpush3.msra.mxu1 (%p1050_p3), %v1145_v14 }
 0x1d3   : > { %1695 = vmatprep.subr.mxu1 (%p1050_p3), %v2118_v7 }
 0x1d4   : > { %1696 = vmatpush3.msra.mxu1 (%p1050_p3), %v1144_v15 }
 0x1d5   : > { %1697 = vmatprep.subr.mxu1 (%p1050_p3), %v2118_v7 }
 0x1d6   : > { %1698 = vmatpush3.msra.mxu1 (%p1050_p3), %v1143_v16 }
 0x1d7   : > { %1699 = vmatprep.subr.mxu1 (%p1050_p3), %v2118_v7 }
 0x1d8   : > { %1700 = vmatpush3.msra.mxu1 (%p1050_p3), %v1142_v17 }
 0x1d9   : > { %1701 = vmatprep.subr.mxu1 (%p1050_p3), %v2118_v7 }
 0x1da   : > { %1702 = vmatpush3.msra.mxu1 (%p1050_p3), %v1141_v18 }
 0x1db   : > { %1703 = vmatprep.subr.mxu1 (%p1050_p3), %v2118_v7 }
 0x1dc   : > { %1704 = vmatpush3.msra.mxu1 (%p1050_p3), %v1140_v19 }
 0x1dd   : > { %1705 = vmatprep.subr.mxu1 (%p1050_p3), %v2118_v7 }
 0x1de   : > { %1706 = vmatpush3.msra.mxu1 (%p1050_p3), %v1139_v20 }
 0x1df   : > { %1707 = vmatprep.subr.mxu1 (%p1050_p3), %v2118_v7 }
 0x1e0   : > { %1708 = vmatpush3.msra.mxu1 (%p1050_p3), %v1138_v21 }
 0x1e1   : > { %1709 = vmatprep.subr.mxu1 (%p1050_p3), %v2118_v7 }
 0x1e2   : > { %1710 = vmatpush3.msra.mxu1 (%p1050_p3), %v1137_v22 }
 0x1e3   : > { %1711 = vmatprep.subr.mxu1 (%p1050_p3), %v2118_v7 }
 0x1e4   : > { %1712 = vmatpush3.msra.mxu1 (%p1050_p3), %v1136_v23 }
 0x1e5   : > { %1713 = vmatprep.subr.mxu1 (%p1050_p3), %v2118_v7 }
 0x1e6   : > { %1714 = vmatpush3.msra.mxu1 (%p1050_p3), %v1135_v24 }
 0x1e7   : > { %1715 = vmatprep.subr.mxu1 (%p1050_p3), %v2118_v7 }
 0x1e8   : > { %1716 = vmatpush3.msra.mxu1 (%p1050_p3), %v1134_v25 }
 0x1e9   : > { %1717 = vmatprep.subr.mxu1 (%p1050_p3), %v2118_v7 }
 0x1ea   : > { %1718 = vmatpush3.msra.mxu1 (%p1050_p3), %v1133_v26 }
 0x28b   : > { %v1676_v57 = vpop.f32.mrf.mxu1 }
 0x28c   : > { %v1030_v58 = vadd.f32 %v1676_v57, %v1562_v55 }
 0x28d   : > { %v1021_v59 = vpop.f32.mrf.mxu1 }
 0x28e   : > { %v1037_v60 = vmax.f32 %v1030_v58, 0.0  ;;  %v1022_v61 = vadd.f32 %v1562_v55, %v1021_v59 }
 0x28f   : > { %v1677_v62 = vpop.f32.mrf.mxu1 }
 0x290   : > { %v1043_v63 = vsel %vm1040_vm2, %v1037_v60, %v1030_v58  ;;  %v1035_v0 = vmax.f32 %v1022_v61, 0.0 }
 0x291   : > { %1046 = vst [vmem:[#allocation2 + $0x10] sm:$0xff] %v1043_v63  ;;  %v1024_v1 = vpop.f32.mrf.mxu1 }
 0x292   : > { %v1041_v2 = vsel %vm1040_vm2, %v1035_v0, %v1022_v61  ;;  %v1025_v3 = vadd.f32 %v1562_v55, %v1024_v1 }
 0x293   : > { %1044 = vst [vmem:[#allocation2] sm:$0xff] %v1041_v2  ;;  %1054 = sbr.rel (!%p1050_p3) target bundleno = 1292 (0x50c), region = 103 }
 0x294   : > { %v1036_v4 = vmax.f32 %v1025_v3, 0.0 }
 0x296   : > { %v1042_v5 = vsel %vm1040_vm2, %v1036_v4, %v1025_v3 }
 0x297   : > { %1045 = vst [vmem:[#allocation2 + $0x8] sm:$0xff] %v1042_v5 }
 0x298   : > { %v1058_v6 = vld [vmem:[#allocation2 + $0x10] sm:$0xff] }
 0x299   : > { %1679 = vmatpush3.msra.mxu0 %v1058_v6 }
 0x29a   : > { %1680 = vmatprep.subr.mxu0 %v2118_v7  ;;  %v1056_v11 = vld [vmem:[#allocation2] sm:$0xff] }
 0x29e   : > { %v1057_v8 = vld [vmem:[#allocation2 + $0x8] sm:$0xff] }
 0x29f   : > { %1681 = vmatpush3.msra.mxu0 %v1057_v8 }
 0x2a0   : > { %1682 = vmatprep.subr.mxu0 %v2118_v7 }
 0x2a1   : > { %1683 = vmatpush3.msra.mxu0 %v1056_v11 }
 0x2a2   : > { %1685 = vmatmul.mubr.msk.f32.vlgmr.msra.gmra.mxu0 %vm1059_vm4, %v1055_v12  ;;  %1722 = vmatprep.subr.mxu0 %v2118_v7 }
 0x2a3   : > { %1754 = vmatprep.mubr.msk.f32.mxu0 %vm2119_vm3, %v2118_v7  ;;  %1723 = vmatpush3.msra.mxu0 %v1242_v27 }
 0x2a4   : > { %1724 = vmatprep.subr.mxu0 %v2118_v7 }
 0x2a5   : > { %1725 = vmatpush3.msra.mxu0 %v1241_v28 }
 0x2a6   : > { %1726 = vmatprep.subr.mxu0 %v2118_v7 }
 0x2a7   : > { %1727 = vmatpush3.msra.mxu0 %v1240_v29 }
 0x2a8   : > { %1728 = vmatprep.subr.mxu0 %v2118_v7 }
 0x2a9   : > { %1729 = vmatpush3.msra.mxu0 %v1239_v30 }
 0x2aa   : > { %1730 = vmatprep.subr.mxu0 %v2118_v7 }
 0x2ab   : > { %1731 = vmatpush3.msra.mxu0 %v1238_v31 }
 0x2ac   : > { %1732 = vmatprep.subr.mxu0 %v2118_v7 }
 0x2ad   : > { %1733 = vmatpush3.msra.mxu0 %v1237_v32 }
 0x2ae   : > { %1734 = vmatprep.subr.mxu0 %v2118_v7 }
 0x2af   : > { %1735 = vmatpush3.msra.mxu0 %v1236_v33 }
 0x2b0   : > { %1736 = vmatprep.subr.mxu0 %v2118_v7 }
 0x2b1   : > { %1737 = vmatpush3.msra.mxu0 %v1235_v34 }
 0x2b2   : > { %1738 = vmatprep.subr.mxu0 %v2118_v7 }
 0x2b3   : > { %1739 = vmatpush3.msra.mxu0 %v1234_v35 }
 0x2b4   : > { %1740 = vmatprep.subr.mxu0 %v2118_v7 }
 0x2b5   : > { %1741 = vmatpush3.msra.mxu0 %v1233_v36 }
 0x2b6   : > { %1742 = vmatprep.subr.mxu0 %v2118_v7 }
 0x2b7   : > { %1743 = vmatpush3.msra.mxu0 %v1232_v37 }
 0x2b8   : > { %1744 = vmatprep.subr.mxu0 %v2118_v7 }
 0x2b9   : > { %1745 = vmatpush3.msra.mxu0 %v1231_v38 }
 0x2ba   : > { %1746 = vmatprep.subr.mxu0 %v2118_v7 }
 0x2bb   : > { %1747 = vmatpush3.msra.mxu0 %v1230_v39 }
 0x2bc   : > { %1748 = vmatprep.subr.mxu0 %v2118_v7 }
 0x2bd   : > { %1749 = vmatpush3.msra.mxu0 %v1229_v42 }
 0x2be   : > { %1750 = vmatprep.subr.mxu0 %v2118_v7 }
 0x2bf   : > { %1751 = vmatpush3.msra.mxu0 %v1228_v43 }
 0x2c0   : > { %1752 = vmatprep.subr.mxu0 %v2118_v7 }
 0x2c1   : > { %1753 = vmatpush3.msra.mxu0 %v1227_v44 }
 0x362   : > { %v1129_v40 = vpop.f32.mrf.mxu0 }
 0x363   : > { %1720 = vmatmul.mubr.f32.vlgmr.msra.gmra.mxu1 %v1129_v40 }
 0x364   : > { %v1686_v41 = vpop.f32.mrf.mxu0 }
 0x423   : > { %v1222_v46 = vpop.f32.mrf.mxu1 }
 0x424   : > { %v1223_v47 = vadd.f32 %v1573_v45, %v1222_v46 }
 0x425   : > { %v1721_v48 = vpop.f32.mrf.mxu1 }
 0x426   : > { %v1226_v49 = vmax.f32 %v1223_v47, 0.0 }
 0x428   : > { %1755 = vmatmul.mubr.f32.vlgmr.msra.gmra.mxu0 %v1226_v49 }
 0x4e8   : > { %v1316_v51 = vpop.f32.mrf.mxu0 }
 0x4e9   : > { %v1317_v52 = vadd.f32 %v1574_v50, %v1316_v51 }
 0x4ea   : > { %v1756_v53 = vpop.f32.mrf.mxu0 }
 0x4eb   : > { %v1575_v54 = vmul.f32 -1.442695, %v1317_v52 }
 0x4ed   : > { %1885 = vpow2.f32 %v1575_v54 }
 0x4fa   : > { %v1886_v55 = vpop.eup %1885 }
 0x4fb   : > { %v1323_v56 = vadd.f32 1.0, %v1886_v55 }
 0x4fd   : > { %1887 = vrcp.f32 %v1323_v56 }
 0x50a   : > { %v1888_v57 = vpop.eup %1887 }
 0x50b   : > { %1326 = vst [vmem:[#allocation16] sm:$0x3] %v1888_v57 }
 0x50c PF: > { %s2573_s21 = sadd.s32 4294967295, %s2100_s26   ;;  %s2120_s16 = smov [#allocation16]  }
 0x50d   : > { %p2498_p9 = scmp.eq.s32.totalorder %s2573_s21, 1  ;;  %s1334_s10 = sshll.u32 %s2120_s16, 4  ;;  %s1335_s10 = int_to_ptr.vmem [resolvable:$true] %s1334_s10 }
 0x50e   : > { %s2008_s19 = scalar_lea.vmem %s1335_s10, 32  ;;  %p2015_p2 = scmp.lt.s32.totalorder %s1335_s10, %s1335_s10 }
 0x50f   : > { %p2009_p10 = scmp.ne.s32.totalorder %s1335_s10, %s2008_s19  ;;  %p2016_p11 = scmp.lt.s32.totalorder %s2008_s19, %s2008_s19 }
 0x511   : > { %p2010_p12 = pnand %p2009_p10, %p2498_p9  ;;  %p2017_p4 = por %p2016_p11, %p2015_p2 }
 0x513   : > { %p2011_p13 = pneg %p2010_p12 }
 0x515   : > { %p2018_p0 = pnand %p2017_p4, %p2011_p13 }
 0x517   : > { %2021 = shalt.err (!%p2018_p0)
}
 0x518   : > { %s2575_s28 = sld [smem:[#allocation28_spill]] }
 0x51e   : > { %1773 = dma.vmem_to_hbm [thread:$0]  (%p2498_p9), %s1335_s10, 32, %s2575_s28, [#allocation10]  }
 0x51f   : > { %2075 = dma.done.wait (%p2498_p9), [#allocation10], 32  }
 0x520   : > { %2077 = vsyncadd (%p2498_p9), [#allocation10], 4294967264 }
 0x521 PF: > { %s40_s26 = sadd.s32 1, %s2100_s26   ;;  %s2576_s30 = sld [smem:[#allocation22_spill]] }
 0x522   : > { %p37_p5 = scmp.ge.s32.totalorder %s40_s26, 4   ;;  %s2577_s1 = smov %s2084_s22 }
 0x523   : > { %s2578_s22 = smov %s2088_s23  ;;  %s2579_s23 = smov %s2297_s15 }
 0x524   : > { %s2580_s24 = smov %s2096_s25  ;;  %39 = sbr.rel (!%p37_p5) target bundleno = 35 (0x23), region = 184 }
 0x527   : > { %s2581_s25 = smov %s2576_s30 }
 0x529   :  { %1347 = vsyncpa [#allocation9], 1 }
 0x52a   :  { %1349 = vsyncpa [#allocation9 + $0x1], 1 }
 0x52b   :  { %1350 = vsyncpa [#allocation14], 1 }
 0x52c   :  { %1351 = vsyncpa [#allocation10], 1 }
 0x52d   :  { %1353 = vsyncpa [#allocation10 + $0x1], 1 }
 0x52e   :  { %1354 = vsyncpa [#allocation11], 1 }
 0x52f   :  { %1356 = vsyncpa [#allocation11 + $0x1], 1 }

</bundles_post_ra>
